<compile_context>
chip_gen: v7x
topology: tpu7x:2x2x1
jax: 0.10.0
libtpu: 0.0.40
codegen_flags: <defaults>
</compile_context>

<pallas_src>
import functools

import jax
import jax.numpy as jnp
from jax import lax
from jax.experimental import pallas as pl
from jax.experimental.pallas import tpu as pltpu


def _pick_tile(dim: int, pref: int) -> int:
    """Largest tile <= pref that divides dim (falls back to the full dim)."""
    if dim <= pref:
        return dim
    t = pref
    while t >= 8:
        if dim % t == 0:
            return t
        t //= 2
    return dim


# ----------------------------------------------------------------------------
# Flash attention kernel (online softmax over Lk blocks, per-head inner loop)
# ----------------------------------------------------------------------------
def _flash_attention_kernel(q_ref, k_ref, v_ref, mask_ref, o_ref,
                            m_sc, l_sc, acc_sc, q_sc,
                            *, heads, head_dim, matmul_dtype):
    ki = pl.program_id(2)
    n_k = pl.num_programs(2)
    D = head_dim

    @pl.when(ki == 0)
    def _init():
        # Hoisted: Q block is resident across the whole ki axis, so the scale
        # multiply / head split / bf16 cast happen once per Q block.
        scale = jnp.float32(1.0 / (D ** 0.5))
        q_full = q_ref[...].astype(jnp.float32) * scale            # (tq, E)
        for h in range(heads):
            q_sc[h] = q_full[:, h * D:(h + 1) * D].astype(matmul_dtype)
        m_sc[...] = jnp.full(m_sc.shape, -jnp.inf, dtype=jnp.float32)
        l_sc[...] = jnp.zeros(l_sc.shape, dtype=jnp.float32)
        acc_sc[...] = jnp.zeros(acc_sc.shape, dtype=jnp.float32)

    invalid = mask_ref[...] == 0                                    # (tq, tk)
    k_full = k_ref[...]                                             # (tk, E)
    v_full = v_ref[...]                                             # (tk, E)

    # Per-head online softmax: only one (tq, tk) score tile live at a time.
    for h in range(heads):
        kh = k_full[:, h * D:(h + 1) * D].astype(matmul_dtype)     # (tk, D)
        vh = v_full[:, h * D:(h + 1) * D].astype(matmul_dtype)     # (tk, D)

        s = lax.dot_general(q_sc[h], kh,
                            dimension_numbers=(((1,), (1,)), ((), ())),
                            preferred_element_type=jnp.float32)    # (tq, tk)
        s = jnp.where(invalid, jnp.float32(-1e20), s)

        m_prev = m_sc[h]                                            # (tq, 1)
        m_new = jnp.maximum(m_prev, jnp.max(s, axis=-1, keepdims=True))
        alpha = jnp.exp(m_prev - m_new)                             # (tq, 1)
        p = jnp.exp(s - m_new)                                      # (tq, tk)

        l_sc[h] = alpha * l_sc[h] + jnp.sum(p, axis=-1, keepdims=True)
        pv = jnp.dot(p.astype(matmul_dtype), vh,
                     preferred_element_type=jnp.float32)            # (tq, D)
        acc_sc[h] = alpha * acc_sc[h] + pv
        m_sc[h] = m_new

    @pl.when(ki == n_k - 1)
    def _finalize():
        outs = []
        for h in range(heads):
            inv_l = pl.reciprocal(l_sc[h], approx=True)             # (tq, 1)
            outs.append((acc_sc[h] * inv_l).astype(o_ref.dtype))
        # Single lane-dense (tq, E) store (no masked sub-128-lane vst).
        o_ref[...] = jnp.concatenate(outs, axis=-1)


def attention_pallas(q, k, v, mask, *, heads,
                     out_dtype=jnp.bfloat16, matmul_dtype=jnp.bfloat16,
                     tq_pref=256, tk_pref=256):
    """q: (N, Lq, E); k, v: (N, Lk, E); mask: (N, 1, Lq, Lk) -> (N, Lq, E)."""
    N, Lq, E = q.shape
    Lk = k.shape[1]
    D = E // heads
    assert D * heads == E

    tq = _pick_tile(Lq, tq_pref)
    tk = _pick_tile(Lk, tk_pref)
    n_q = Lq // tq
    n_k = Lk // tk

    kernel = functools.partial(_flash_attention_kernel, heads=heads,
                               head_dim=D, matmul_dtype=matmul_dtype)

    return pl.pallas_call(
        kernel,
        out_shape=jax.ShapeDtypeStruct((N, Lq, E), out_dtype),
        grid=(N, n_q, n_k),
        in_specs=[
            pl.BlockSpec((None, tq, E), lambda n, qi, ki: (n, qi, 0)),      # Q
            pl.BlockSpec((None, tk, E), lambda n, qi, ki: (n, ki, 0)),      # K
            pl.BlockSpec((None, tk, E), lambda n, qi, ki: (n, ki, 0)),      # V
            pl.BlockSpec((None, None, tq, tk),
                         lambda n, qi, ki: (n, 0, qi, ki)),                 # mask
        ],
        out_specs=pl.BlockSpec((None, tq, E), lambda n, qi, ki: (n, qi, 0)),
        scratch_shapes=[
            pltpu.VMEM((heads, tq, 1), jnp.float32),    # running max m
            pltpu.VMEM((heads, tq, 1), jnp.float32),    # running sum l
            pltpu.VMEM((heads, tq, D), jnp.float32),    # output accumulator
            pltpu.VMEM((heads, tq, D), matmul_dtype),   # hoisted scaled Q
        ],
        compiler_params=pltpu.CompilerParams(
            dimension_semantics=("parallel", "parallel", "arbitrary"),
            vmem_limit_bytes=64 * 1024 * 1024),
    )(q, k, v, mask)


# ----------------------------------------------------------------------------
# fc_out: y = x @ W^T + b   (tiled, pipelined; W kept in PyTorch layout)
# ----------------------------------------------------------------------------
def _fc_kernel(x_ref, w_ref, b_ref, o_ref, acc_ref, *, matmul_dtype):
    kk = pl.program_id(2)

    @pl.when(kk == 0)
    def _init():
        acc_ref[...] = jnp.zeros(acc_ref.shape, dtype=jnp.float32)

    # x: (tm, tk), w: (tn, tk) -> contract on E_in (dim 1 of both) = x @ w.T
    # bf16 operands + f32 accumulation (native MXU recipe on all generations).
    acc_ref[...] += lax.dot_general(
        x_ref[...].astype(matmul_dtype), w_ref[...].astype(matmul_dtype),
        dimension_numbers=(((1,), (1,)), ((), ())),
        preferred_element_type=jnp.float32)

    @pl.when(kk == pl.num_programs(2) - 1)
    def _finalize():
        o_ref[...] = (acc_ref[...] + b_ref[...].astype(jnp.float32)
                      ).astype(o_ref.dtype)


def fc_pallas(x, w, b, *, out_dtype=jnp.float32, matmul_dtype=jnp.bfloat16,
              tm_pref=512, tn_pref=256, tk_pref=256):
    """x: (M, E_in), w: (E_out, E_in) [PyTorch Linear layout], b: (E_out,)."""
    M, E_in = x.shape
    E_out = w.shape[0]
    tm = _pick_tile(M, tm_pref)
    tn = _pick_tile(E_out, tn_pref)
    tk = _pick_tile(E_in, tk_pref)
    b2 = b.reshape(1, E_out)

    kernel = functools.partial(_fc_kernel, matmul_dtype=matmul_dtype)

    return pl.pallas_call(
        kernel,
        out_shape=jax.ShapeDtypeStruct((M, E_out), out_dtype),
        grid=(M // tm, E_out // tn, E_in // tk),
        in_specs=[
            pl.BlockSpec((tm, tk), lambda i, j, kk: (i, kk)),
            pl.BlockSpec((tn, tk), lambda i, j, kk: (j, kk)),
            pl.BlockSpec((1, tn), lambda i, j, kk: (0, j)),
        ],
        out_specs=pl.BlockSpec((tm, tn), lambda i, j, kk: (i, j)),
        scratch_shapes=[pltpu.VMEM((tm, tn), jnp.float32)],
        compiler_params=pltpu.CompilerParams(
            dimension_semantics=("parallel", "parallel", "arbitrary"),
            vmem_limit_bytes=64 * 1024 * 1024),
    )(x, w, b2)


# ----------------------------------------------------------------------------
# Module wrapper — bf16 K/V streaming, bf16 intermediate, f32 final output
# ----------------------------------------------------------------------------
def self_attention_forward(values, keys, query, mask, fc_w, fc_b, heads,
                           matmul_dtype=jnp.bfloat16):
    N, Lq, E = query.shape
    Lk = keys.shape[1]

    if mask is None:
        mask = jnp.ones((N, 1, Lq, Lk), dtype=jnp.float32)
    mask = jnp.broadcast_to(mask, (N, 1, Lq, Lk)).astype(jnp.float32)

    # K/V are re-streamed once per Q block by the flash grid; bf16 halves that
    # repeated HBM traffic. Q stays f32 (streamed once, scaled in f32 in-kernel).
    k_bf = keys.astype(matmul_dtype)
    v_bf = values.astype(matmul_dtype)

    attn = attention_pallas(query, k_bf, v_bf, mask, heads=heads,
                            out_dtype=matmul_dtype,
                            matmul_dtype=matmul_dtype)          # (N, Lq, E) bf16
    y = fc_pallas(attn.reshape(N * Lq, E), fc_w.astype(matmul_dtype), fc_b,
                  out_dtype=query.dtype, matmul_dtype=matmul_dtype)
    return y.reshape(N, Lq, E)


# Pure-JAX reference (matches the PyTorch forward, f32 throughout).
def _reference(values, keys, query, mask, fc_w, fc_b, heads):
    N, Lq, E = query.shape
    Lk = keys.shape[1]
    D = E // heads
    q = query.reshape(N, Lq, heads, D)
    k = keys.reshape(N, Lk, heads, D)
    v = values.reshape(N, Lk, heads, D)
    energy = jnp.einsum('nqhd,nkhd->nhqk', q, k)
    energy = jnp.where(mask == 0, jnp.float32(-1e20), energy)
    attn = jax.nn.softmax(energy / (D ** 0.5), axis=-1)
    out = jnp.einsum('nhql,nlhd->nqhd', attn, v).reshape(N, Lq, E)
    return out @ fc_w.T + fc_b


def _run_case(key, N, L, heads, embed, masked_cols):
    kv, kk_, kq, kw, kb = jax.random.split(key, 5)
    values = jax.random.normal(kv, (N, L, embed), dtype=jnp.float32)
    keys_ = jax.random.normal(kk_, (N, L, embed), dtype=jnp.float32)
    query = jax.random.normal(kq, (N, L, embed), dtype=jnp.float32)

    mask = jnp.ones((N, 1, L, L), dtype=jnp.float32)
    mask = mask.at[N - 1, :, :, masked_cols[0]:masked_cols[1]].set(0.0)

    fc_w = jax.random.normal(kw, (embed, embed), dtype=jnp.float32) * 0.1
    fc_b = jax.random.normal(kb, (embed,), dtype=jnp.float32) * 0.1

    out = self_attention_forward(values, keys_, query, mask, fc_w, fc_b, heads)
    out = jax.block_until_ready(out)

    ref = _reference(values, keys_, query, mask, fc_w, fc_b, heads)
    assert out.shape == (N, L, embed)
    # bf16 inputs / bf16 intermediate (f32 accumulation) vs. an f32 reference.
    err = float(jnp.max(jnp.abs(out - ref)))
    assert jnp.allclose(out, ref, atol=1e-1, rtol=1e-1), f"max abs err {err}"


if __name__ == "__main__":
    key = jax.random.PRNGKey(0)
    k1, k2 = jax.random.split(key, 2)

    # Small case (single block; shapes consistent with the module demo).
    _run_case(k1, N=2, L=8, heads=4, embed=32, masked_cols=(6, 8))

    # Larger case exercising the multi-block flash loop (2 Q-blocks x 2 K-blocks
    # at the 256 tile preference) with a mask region crossing the K-block edge.
    _run_case(k2, N=2, L=512, heads=4, embed=128, masked_cols=(100, 300))

    print("KERNEL_OK")
</pallas_src>

<mosaic_0001>
module attributes {stable_mosaic.version = 11 : i64} {
  func.func @_flash_attention_kernel(%arg0: i32, %arg1: i32, %arg2: i32, %arg3: memref<1x8x32xf32, #tpu.memory_space<vmem>>, %arg4: memref<1x8x32xbf16, #tpu.memory_space<vmem>>, %arg5: memref<1x8x32xbf16, #tpu.memory_space<vmem>>, %arg6: memref<1x1x8x8xf32, #tpu.memory_space<vmem>>, %arg7: memref<1x8x32xbf16, #tpu.memory_space<vmem>>, %arg8: memref<4x8x1xf32, #tpu.memory_space<vmem>>, %arg9: memref<4x8x1xf32, #tpu.memory_space<vmem>>, %arg10: memref<4x8x8xf32, #tpu.memory_space<vmem>>, %arg11: memref<4x8x8xbf16, #tpu.memory_space<vmem>>) attributes {dimension_semantics = [#tpu.dimension_semantics<parallel>, #tpu.dimension_semantics<parallel>, #tpu.dimension_semantics<arbitrary>], iteration_bounds = array<i64: 2, 1, 1>, scalar_prefetch = 0 : i64, scratch_operands = 4 : i64, tpu.core_type = #tpu.core_type<tc>, window_params = [{transform_indices = @transform_0, window_bounds = array<i64: 1, 8, 32>}, {transform_indices = @transform_1, window_bounds = array<i64: 1, 8, 32>}, {transform_indices = @transform_2, window_bounds = array<i64: 1, 8, 32>}, {transform_indices = @transform_3, window_bounds = array<i64: 1, 1, 8, 8>}, {transform_indices = @transform_4, window_bounds = array<i64: 1, 8, 32>}]} {
    %c0_i32 = arith.constant 0 : i32
    %0 = arith.cmpi eq, %arg2, %c0_i32 : i32
    %1 = arith.extui %0 : i1 to i32
    %c0_i32_0 = arith.constant 0 : i32
    %2 = arith.cmpi ne, %1, %c0_i32_0 : i32
    scf.if %2 {
      %c0_113 = arith.constant 0 : index
      %c0_114 = arith.constant 0 : index
      %c0_115 = arith.constant 0 : index
      %170 = vector.load %arg3[%c0_113, %c0_114, %c0_115] : memref<1x8x32xf32, #tpu.memory_space<vmem>>, vector<1x8x32xf32>
      %171 = vector.shape_cast %170 : vector<1x8x32xf32> to vector<8x32xf32>
      %cst_116 = arith.constant 0.353553385 : f32
      %172 = vector.broadcast %cst_116 : f32 to vector<8x32xf32>
      %173 = arith.mulf %171, %172 : vector<8x32xf32>
      %174 = vector.extract_strided_slice %173 {offsets = [0, 0], sizes = [8, 8], strides = [1, 1]} : vector<8x32xf32> to vector<8x8xf32>
      %175 = arith.truncf %174 : vector<8x8xf32> to vector<8x8xbf16>
      %c0_117 = arith.constant 0 : index
      %c0_118 = arith.constant 0 : index
      %c0_119 = arith.constant 0 : index
      %176 = vector.load %arg11[%c0_117, %c0_118, %c0_119] : memref<4x8x8xbf16, #tpu.memory_space<vmem>>, vector<1x8x8xbf16>
      %177 = vector.shape_cast %176 : vector<1x8x8xbf16> to vector<8x8xbf16>
      %178 = vector.shape_cast %175 : vector<8x8xbf16> to vector<1x8x8xbf16>
      tpu.vector_store %arg11[%c0_117, %c0_118, %c0_119], %178 {strides = array<i32>} : memref<4x8x8xbf16, #tpu.memory_space<vmem>>, vector<1x8x8xbf16>,
      %179 = vector.extract_strided_slice %173 {offsets = [0, 8], sizes = [8, 8], strides = [1, 1]} : vector<8x32xf32> to vector<8x8xf32>
      %180 = arith.truncf %179 : vector<8x8xf32> to vector<8x8xbf16>
      %c1_120 = arith.constant 1 : index
      %c0_121 = arith.constant 0 : index
      %c0_122 = arith.constant 0 : index
      %181 = vector.load %arg11[%c1_120, %c0_121, %c0_122] : memref<4x8x8xbf16, #tpu.memory_space<vmem>>, vector<1x8x8xbf16>
      %182 = vector.shape_cast %181 : vector<1x8x8xbf16> to vector<8x8xbf16>
      %183 = vector.shape_cast %180 : vector<8x8xbf16> to vector<1x8x8xbf16>
      tpu.vector_store %arg11[%c1_120, %c0_121, %c0_122], %183 {strides = array<i32>} : memref<4x8x8xbf16, #tpu.memory_space<vmem>>, vector<1x8x8xbf16>,
      %184 = vector.extract_strided_slice %173 {offsets = [0, 16], sizes = [8, 8], strides = [1, 1]} : vector<8x32xf32> to vector<8x8xf32>
      %185 = arith.truncf %184 : vector<8x8xf32> to vector<8x8xbf16>
      %c2_123 = arith.constant 2 : index
      %c0_124 = arith.constant 0 : index
      %c0_125 = arith.constant 0 : index
      %186 = vector.load %arg11[%c2_123, %c0_124, %c0_125] : memref<4x8x8xbf16, #tpu.memory_space<vmem>>, vector<1x8x8xbf16>
      %187 = vector.shape_cast %186 : vector<1x8x8xbf16> to vector<8x8xbf16>
      %188 = vector.shape_cast %185 : vector<8x8xbf16> to vector<1x8x8xbf16>
      tpu.vector_store %arg11[%c2_123, %c0_124, %c0_125], %188 {strides = array<i32>} : memref<4x8x8xbf16, #tpu.memory_space<vmem>>, vector<1x8x8xbf16>,
      %189 = vector.extract_strided_slice %173 {offsets = [0, 24], sizes = [8, 8], strides = [1, 1]} : vector<8x32xf32> to vector<8x8xf32>
      %190 = arith.truncf %189 : vector<8x8xf32> to vector<8x8xbf16>
      %c3_126 = arith.constant 3 : index
      %c0_127 = arith.constant 0 : index
      %c0_128 = arith.constant 0 : index
      %191 = vector.load %arg11[%c3_126, %c0_127, %c0_128] : memref<4x8x8xbf16, #tpu.memory_space<vmem>>, vector<1x8x8xbf16>
      %192 = vector.shape_cast %191 : vector<1x8x8xbf16> to vector<8x8xbf16>
      %193 = vector.shape_cast %190 : vector<8x8xbf16> to vector<1x8x8xbf16>
      tpu.vector_store %arg11[%c3_126, %c0_127, %c0_128], %193 {strides = array<i32>} : memref<4x8x8xbf16, #tpu.memory_space<vmem>>, vector<1x8x8xbf16>,
      %cst_129 = arith.constant 0xFF800000 : f32
      %194 = vector.broadcast %cst_129 : f32 to vector<4x8x1xf32>
      %c0_130 = arith.constant 0 : index
      %c0_131 = arith.constant 0 : index
      %c0_132 = arith.constant 0 : index
      %195 = vector.load %arg8[%c0_130, %c0_131, %c0_132] : memref<4x8x1xf32, #tpu.memory_space<vmem>>, vector<4x8x1xf32>
      tpu.vector_store %arg8[%c0_130, %c0_131, %c0_132], %194 {strides = array<i32>} : memref<4x8x1xf32, #tpu.memory_space<vmem>>, vector<4x8x1xf32>,
      %cst_133 = arith.constant 0.000000e+00 : f32
      %196 = vector.broadcast %cst_133 : f32 to vector<4x8x1xf32>
      %c0_134 = arith.constant 0 : index
      %c0_135 = arith.constant 0 : index
      %c0_136 = arith.constant 0 : index
      %197 = vector.load %arg9[%c0_134, %c0_135, %c0_136] : memref<4x8x1xf32, #tpu.memory_space<vmem>>, vector<4x8x1xf32>
      tpu.vector_store %arg9[%c0_134, %c0_135, %c0_136], %196 {strides = array<i32>} : memref<4x8x1xf32, #tpu.memory_space<vmem>>, vector<4x8x1xf32>,
      %cst_137 = arith.constant 0.000000e+00 : f32
      %198 = vector.broadcast %cst_137 : f32 to vector<4x8x8xf32>
      %c0_138 = arith.constant 0 : index
      %c0_139 = arith.constant 0 : index
      %c0_140 = arith.constant 0 : index
      %199 = vector.load %arg10[%c0_138, %c0_139, %c0_140] : memref<4x8x8xf32, #tpu.memory_space<vmem>>, vector<4x8x8xf32>
      tpu.vector_store %arg10[%c0_138, %c0_139, %c0_140], %198 {strides = array<i32>} : memref<4x8x8xf32, #tpu.memory_space<vmem>>, vector<4x8x8xf32>,
    } else {
    }
    %c0 = arith.constant 0 : index
    %c0_1 = arith.constant 0 : index
    %c0_2 = arith.constant 0 : index
    %c0_3 = arith.constant 0 : index
    %3 = vector.load %arg6[%c0, %c0_1, %c0_2, %c0_3] : memref<1x1x8x8xf32, #tpu.memory_space<vmem>>, vector<1x1x8x8xf32>
    %4 = vector.shape_cast %3 : vector<1x1x8x8xf32> to vector<8x8xf32>
    %cst = arith.constant 0.000000e+00 : f32
    %5 = vector.broadcast %cst : f32 to vector<8x8xf32>
    %6 = arith.cmpf oeq, %4, %5 : vector<8x8xf32>
    %c0_4 = arith.constant 0 : index
    %c0_5 = arith.constant 0 : index
    %c0_6 = arith.constant 0 : index
    %7 = vector.load %arg4[%c0_4, %c0_5, %c0_6] : memref<1x8x32xbf16, #tpu.memory_space<vmem>>, vector<1x8x32xbf16>
    %8 = vector.shape_cast %7 : vector<1x8x32xbf16> to vector<8x32xbf16>
    %c0_7 = arith.constant 0 : index
    %c0_8 = arith.constant 0 : index
    %c0_9 = arith.constant 0 : index
    %9 = vector.load %arg5[%c0_7, %c0_8, %c0_9] : memref<1x8x32xbf16, #tpu.memory_space<vmem>>, vector<1x8x32xbf16>
    %10 = vector.shape_cast %9 : vector<1x8x32xbf16> to vector<8x32xbf16>
    %11 = vector.extract_strided_slice %8 {offsets = [0, 0], sizes = [8, 8], strides = [1, 1]} : vector<8x32xbf16> to vector<8x8xbf16>
    %12 = vector.extract_strided_slice %10 {offsets = [0, 0], sizes = [8, 8], strides = [1, 1]} : vector<8x32xbf16> to vector<8x8xbf16>
    %c0_10 = arith.constant 0 : index
    %c0_11 = arith.constant 0 : index
    %c0_12 = arith.constant 0 : index
    %13 = vector.load %arg11[%c0_10, %c0_11, %c0_12] : memref<4x8x8xbf16, #tpu.memory_space<vmem>>, vector<1x8x8xbf16>
    %14 = vector.shape_cast %13 : vector<1x8x8xbf16> to vector<8x8xbf16>
    %cst_13 = arith.constant dense<0.000000e+00> : vector<8x8xf32>
    %15 = tpu.matmul %14, %11, %cst_13 {dimension_numbers = #tpu.dot_dimension_numbers<[1], [1], [0], [0], [0, 0, 1, 0], [], []>} : vector<8x8xbf16>, vector<8x8xbf16>, vector<8x8xf32> -> vector<8x8xf32>
    %cst_14 = arith.constant -1.000000e+20 : f32
    %16 = vector.broadcast %cst_14 : f32 to vector<8x8xf32>
    %17 = arith.select %6, %16, %15 : vector<8x8xi1>, vector<8x8xf32>
    %c0_15 = arith.constant 0 : index
    %c0_16 = arith.constant 0 : index
    %c0_17 = arith.constant 0 : index
    %18 = vector.load %arg8[%c0_15, %c0_16, %c0_17] : memref<4x8x1xf32, #tpu.memory_space<vmem>>, vector<1x8x1xf32>
    %19 = vector.shape_cast %18 : vector<1x8x1xf32> to vector<8x1xf32>
    %cst_18 = arith.constant dense<0xFF800000> : vector<8xf32>
    %20 = vector.multi_reduction <maximumf>, %17, %cst_18 [1] : vector<8x8xf32> to vector<8xf32>
    %21 = vector.shape_cast %20 : vector<8xf32> to vector<8x1xf32>
    %22 = arith.maximumf %19, %21 : vector<8x1xf32>
    %23 = arith.subf %19, %22 : vector<8x1xf32>
    %24 = math.exp %23 : vector<8x1xf32>
    %25 = vector.broadcast %22 : vector<8x1xf32> to vector<8x8xf32>
    %26 = arith.subf %17, %25 : vector<8x8xf32>
    %27 = math.exp %26 : vector<8x8xf32>
    %c0_19 = arith.constant 0 : index
    %c0_20 = arith.constant 0 : index
    %c0_21 = arith.constant 0 : index
    %28 = vector.load %arg9[%c0_19, %c0_20, %c0_21] : memref<4x8x1xf32, #tpu.memory_space<vmem>>, vector<1x8x1xf32>
    %29 = vector.shape_cast %28 : vector<1x8x1xf32> to vector<8x1xf32>
    %30 = arith.mulf %24, %29 : vector<8x1xf32>
    %cst_22 = arith.constant dense<0.000000e+00> : vector<8xf32>
    %31 = vector.multi_reduction <add>, %27, %cst_22 [1] : vector<8x8xf32> to vector<8xf32>
    %32 = vector.shape_cast %31 : vector<8xf32> to vector<8x1xf32>
    %33 = arith.addf %30, %32 : vector<8x1xf32>
    %c0_23 = arith.constant 0 : index
    %c0_24 = arith.constant 0 : index
    %c0_25 = arith.constant 0 : index
    %34 = vector.load %arg9[%c0_23, %c0_24, %c0_25] : memref<4x8x1xf32, #tpu.memory_space<vmem>>, vector<1x8x1xf32>
    %35 = vector.shape_cast %34 : vector<1x8x1xf32> to vector<8x1xf32>
    %36 = vector.shape_cast %33 : vector<8x1xf32> to vector<1x8x1xf32>
    tpu.vector_store %arg9[%c0_23, %c0_24, %c0_25], %36 {strides = array<i32>} : memref<4x8x1xf32, #tpu.memory_space<vmem>>, vector<1x8x1xf32>,
    %37 = arith.truncf %27 : vector<8x8xf32> to vector<8x8xbf16>
    %cst_26 = arith.constant dense<0.000000e+00> : vector<8x8xf32>
    %38 = tpu.matmul %37, %12, %cst_26 {dimension_numbers = #tpu.dot_dimension_numbers<[1], [0], [0], [1], [0, 0, 1, 1], [], []>} : vector<8x8xbf16>, vector<8x8xbf16>, vector<8x8xf32> -> vector<8x8xf32>
    %c0_27 = arith.constant 0 : index
    %c0_28 = arith.constant 0 : index
    %c0_29 = arith.constant 0 : index
    %39 = vector.load %arg10[%c0_27, %c0_28, %c0_29] : memref<4x8x8xf32, #tpu.memory_space<vmem>>, vector<1x8x8xf32>
    %40 = vector.shape_cast %39 : vector<1x8x8xf32> to vector<8x8xf32>
    %41 = vector.broadcast %24 : vector<8x1xf32> to vector<8x8xf32>
    %42 = arith.mulf %41, %40 : vector<8x8xf32>
    %43 = arith.addf %42, %38 : vector<8x8xf32>
    %c0_30 = arith.constant 0 : index
    %c0_31 = arith.constant 0 : index
    %c0_32 = arith.constant 0 : index
    %44 = vector.load %arg10[%c0_30, %c0_31, %c0_32] : memref<4x8x8xf32, #tpu.memory_space<vmem>>, vector<1x8x8xf32>
    %45 = vector.shape_cast %44 : vector<1x8x8xf32> to vector<8x8xf32>
    %46 = vector.shape_cast %43 : vector<8x8xf32> to vector<1x8x8xf32>
    tpu.vector_store %arg10[%c0_30, %c0_31, %c0_32], %46 {strides = array<i32>} : memref<4x8x8xf32, #tpu.memory_space<vmem>>, vector<1x8x8xf32>,
    %c0_33 = arith.constant 0 : index
    %c0_34 = arith.constant 0 : index
    %c0_35 = arith.constant 0 : index
    %47 = vector.load %arg8[%c0_33, %c0_34, %c0_35] : memref<4x8x1xf32, #tpu.memory_space<vmem>>, vector<1x8x1xf32>
    %48 = vector.shape_cast %47 : vector<1x8x1xf32> to vector<8x1xf32>
    %49 = vector.shape_cast %22 : vector<8x1xf32> to vector<1x8x1xf32>
    tpu.vector_store %arg8[%c0_33, %c0_34, %c0_35], %49 {strides = array<i32>} : memref<4x8x1xf32, #tpu.memory_space<vmem>>, vector<1x8x1xf32>,
    %50 = vector.extract_strided_slice %8 {offsets = [0, 8], sizes = [8, 8], strides = [1, 1]} : vector<8x32xbf16> to vector<8x8xbf16>
    %51 = vector.extract_strided_slice %10 {offsets = [0, 8], sizes = [8, 8], strides = [1, 1]} : vector<8x32xbf16> to vector<8x8xbf16>
    %c1 = arith.constant 1 : index
    %c0_36 = arith.constant 0 : index
    %c0_37 = arith.constant 0 : index
    %52 = vector.load %arg11[%c1, %c0_36, %c0_37] : memref<4x8x8xbf16, #tpu.memory_space<vmem>>, vector<1x8x8xbf16>
    %53 = vector.shape_cast %52 : vector<1x8x8xbf16> to vector<8x8xbf16>
    %cst_38 = arith.constant dense<0.000000e+00> : vector<8x8xf32>
    %54 = tpu.matmul %53, %50, %cst_38 {dimension_numbers = #tpu.dot_dimension_numbers<[1], [1], [0], [0], [0, 0, 1, 0], [], []>} : vector<8x8xbf16>, vector<8x8xbf16>, vector<8x8xf32> -> vector<8x8xf32>
    %cst_39 = arith.constant -1.000000e+20 : f32
    %55 = vector.broadcast %cst_39 : f32 to vector<8x8xf32>
    %56 = arith.select %6, %55, %54 : vector<8x8xi1>, vector<8x8xf32>
    %c1_40 = arith.constant 1 : index
    %c0_41 = arith.constant 0 : index
    %c0_42 = arith.constant 0 : index
    %57 = vector.load %arg8[%c1_40, %c0_41, %c0_42] : memref<4x8x1xf32, #tpu.memory_space<vmem>>, vector<1x8x1xf32>
    %58 = vector.shape_cast %57 : vector<1x8x1xf32> to vector<8x1xf32>
    %cst_43 = arith.constant dense<0xFF800000> : vector<8xf32>
    %59 = vector.multi_reduction <maximumf>, %56, %cst_43 [1] : vector<8x8xf32> to vector<8xf32>
    %60 = vector.shape_cast %59 : vector<8xf32> to vector<8x1xf32>
    %61 = arith.maximumf %58, %60 : vector<8x1xf32>
    %62 = arith.subf %58, %61 : vector<8x1xf32>
    %63 = math.exp %62 : vector<8x1xf32>
    %64 = vector.broadcast %61 : vector<8x1xf32> to vector<8x8xf32>
    %65 = arith.subf %56, %64 : vector<8x8xf32>
    %66 = math.exp %65 : vector<8x8xf32>
    %c1_44 = arith.constant 1 : index
    %c0_45 = arith.constant 0 : index
    %c0_46 = arith.constant 0 : index
    %67 = vector.load %arg9[%c1_44, %c0_45, %c0_46] : memref<4x8x1xf32, #tpu.memory_space<vmem>>, vector<1x8x1xf32>
    %68 = vector.shape_cast %67 : vector<1x8x1xf32> to vector<8x1xf32>
    %69 = arith.mulf %63, %68 : vector<8x1xf32>
    %cst_47 = arith.constant dense<0.000000e+00> : vector<8xf32>
    %70 = vector.multi_reduction <add>, %66, %cst_47 [1] : vector<8x8xf32> to vector<8xf32>
    %71 = vector.shape_cast %70 : vector<8xf32> to vector<8x1xf32>
    %72 = arith.addf %69, %71 : vector<8x1xf32>
    %c1_48 = arith.constant 1 : index
    %c0_49 = arith.constant 0 : index
    %c0_50 = arith.constant 0 : index
    %73 = vector.load %arg9[%c1_48, %c0_49, %c0_50] : memref<4x8x1xf32, #tpu.memory_space<vmem>>, vector<1x8x1xf32>
    %74 = vector.shape_cast %73 : vector<1x8x1xf32> to vector<8x1xf32>
    %75 = vector.shape_cast %72 : vector<8x1xf32> to vector<1x8x1xf32>
    tpu.vector_store %arg9[%c1_48, %c0_49, %c0_50], %75 {strides = array<i32>} : memref<4x8x1xf32, #tpu.memory_space<vmem>>, vector<1x8x1xf32>,
    %76 = arith.truncf %66 : vector<8x8xf32> to vector<8x8xbf16>
    %cst_51 = arith.constant dense<0.000000e+00> : vector<8x8xf32>
    %77 = tpu.matmul %76, %51, %cst_51 {dimension_numbers = #tpu.dot_dimension_numbers<[1], [0], [0], [1], [0, 0, 1, 1], [], []>} : vector<8x8xbf16>, vector<8x8xbf16>, vector<8x8xf32> -> vector<8x8xf32>
    %c1_52 = arith.constant 1 : index
    %c0_53 = arith.constant 0 : index
    %c0_54 = arith.constant 0 : index
    %78 = vector.load %arg10[%c1_52, %c0_53, %c0_54] : memref<4x8x8xf32, #tpu.memory_space<vmem>>, vector<1x8x8xf32>
    %79 = vector.shape_cast %78 : vector<1x8x8xf32> to vector<8x8xf32>
    %80 = vector.broadcast %63 : vector<8x1xf32> to vector<8x8xf32>
    %81 = arith.mulf %80, %79 : vector<8x8xf32>
    %82 = arith.addf %81, %77 : vector<8x8xf32>
    %c1_55 = arith.constant 1 : index
    %c0_56 = arith.constant 0 : index
    %c0_57 = arith.constant 0 : index
    %83 = vector.load %arg10[%c1_55, %c0_56, %c0_57] : memref<4x8x8xf32, #tpu.memory_space<vmem>>, vector<1x8x8xf32>
    %84 = vector.shape_cast %83 : vector<1x8x8xf32> to vector<8x8xf32>
    %85 = vector.shape_cast %82 : vector<8x8xf32> to vector<1x8x8xf32>
    tpu.vector_store %arg10[%c1_55, %c0_56, %c0_57], %85 {strides = array<i32>} : memref<4x8x8xf32, #tpu.memory_space<vmem>>, vector<1x8x8xf32>,
    %c1_58 = arith.constant 1 : index
    %c0_59 = arith.constant 0 : index
    %c0_60 = arith.constant 0 : index
    %86 = vector.load %arg8[%c1_58, %c0_59, %c0_60] : memref<4x8x1xf32, #tpu.memory_space<vmem>>, vector<1x8x1xf32>
    %87 = vector.shape_cast %86 : vector<1x8x1xf32> to vector<8x1xf32>
    %88 = vector.shape_cast %61 : vector<8x1xf32> to vector<1x8x1xf32>
    tpu.vector_store %arg8[%c1_58, %c0_59, %c0_60], %88 {strides = array<i32>} : memref<4x8x1xf32, #tpu.memory_space<vmem>>, vector<1x8x1xf32>,
    %89 = vector.extract_strided_slice %8 {offsets = [0, 16], sizes = [8, 8], strides = [1, 1]} : vector<8x32xbf16> to vector<8x8xbf16>
    %90 = vector.extract_strided_slice %10 {offsets = [0, 16], sizes = [8, 8], strides = [1, 1]} : vector<8x32xbf16> to vector<8x8xbf16>
    %c2 = arith.constant 2 : index
    %c0_61 = arith.constant 0 : index
    %c0_62 = arith.constant 0 : index
    %91 = vector.load %arg11[%c2, %c0_61, %c0_62] : memref<4x8x8xbf16, #tpu.memory_space<vmem>>, vector<1x8x8xbf16>
    %92 = vector.shape_cast %91 : vector<1x8x8xbf16> to vector<8x8xbf16>
    %cst_63 = arith.constant dense<0.000000e+00> : vector<8x8xf32>
    %93 = tpu.matmul %92, %89, %cst_63 {dimension_numbers = #tpu.dot_dimension_numbers<[1], [1], [0], [0], [0, 0, 1, 0], [], []>} : vector<8x8xbf16>, vector<8x8xbf16>, vector<8x8xf32> -> vector<8x8xf32>
    %cst_64 = arith.constant -1.000000e+20 : f32
    %94 = vector.broadcast %cst_64 : f32 to vector<8x8xf32>
    %95 = arith.select %6, %94, %93 : vector<8x8xi1>, vector<8x8xf32>
    %c2_65 = arith.constant 2 : index
    %c0_66 = arith.constant 0 : index
    %c0_67 = arith.constant 0 : index
    %96 = vector.load %arg8[%c2_65, %c0_66, %c0_67] : memref<4x8x1xf32, #tpu.memory_space<vmem>>, vector<1x8x1xf32>
    %97 = vector.shape_cast %96 : vector<1x8x1xf32> to vector<8x1xf32>
    %cst_68 = arith.constant dense<0xFF800000> : vector<8xf32>
    %98 = vector.multi_reduction <maximumf>, %95, %cst_68 [1] : vector<8x8xf32> to vector<8xf32>
    %99 = vector.shape_cast %98 : vector<8xf32> to vector<8x1xf32>
    %100 = arith.maximumf %97, %99 : vector<8x1xf32>
    %101 = arith.subf %97, %100 : vector<8x1xf32>
    %102 = math.exp %101 : vector<8x1xf32>
    %103 = vector.broadcast %100 : vector<8x1xf32> to vector<8x8xf32>
    %104 = arith.subf %95, %103 : vector<8x8xf32>
    %105 = math.exp %104 : vector<8x8xf32>
    %c2_69 = arith.constant 2 : index
    %c0_70 = arith.constant 0 : index
    %c0_71 = arith.constant 0 : index
    %106 = vector.load %arg9[%c2_69, %c0_70, %c0_71] : memref<4x8x1xf32, #tpu.memory_space<vmem>>, vector<1x8x1xf32>
    %107 = vector.shape_cast %106 : vector<1x8x1xf32> to vector<8x1xf32>
    %108 = arith.mulf %102, %107 : vector<8x1xf32>
    %cst_72 = arith.constant dense<0.000000e+00> : vector<8xf32>
    %109 = vector.multi_reduction <add>, %105, %cst_72 [1] : vector<8x8xf32> to vector<8xf32>
    %110 = vector.shape_cast %109 : vector<8xf32> to vector<8x1xf32>
    %111 = arith.addf %108, %110 : vector<8x1xf32>
    %c2_73 = arith.constant 2 : index
    %c0_74 = arith.constant 0 : index
    %c0_75 = arith.constant 0 : index
    %112 = vector.load %arg9[%c2_73, %c0_74, %c0_75] : memref<4x8x1xf32, #tpu.memory_space<vmem>>, vector<1x8x1xf32>
    %113 = vector.shape_cast %112 : vector<1x8x1xf32> to vector<8x1xf32>
    %114 = vector.shape_cast %111 : vector<8x1xf32> to vector<1x8x1xf32>
    tpu.vector_store %arg9[%c2_73, %c0_74, %c0_75], %114 {strides = array<i32>} : memref<4x8x1xf32, #tpu.memory_space<vmem>>, vector<1x8x1xf32>,
    %115 = arith.truncf %105 : vector<8x8xf32> to vector<8x8xbf16>
    %cst_76 = arith.constant dense<0.000000e+00> : vector<8x8xf32>
    %116 = tpu.matmul %115, %90, %cst_76 {dimension_numbers = #tpu.dot_dimension_numbers<[1], [0], [0], [1], [0, 0, 1, 1], [], []>} : vector<8x8xbf16>, vector<8x8xbf16>, vector<8x8xf32> -> vector<8x8xf32>
    %c2_77 = arith.constant 2 : index
    %c0_78 = arith.constant 0 : index
    %c0_79 = arith.constant 0 : index
    %117 = vector.load %arg10[%c2_77, %c0_78, %c0_79] : memref<4x8x8xf32, #tpu.memory_space<vmem>>, vector<1x8x8xf32>
    %118 = vector.shape_cast %117 : vector<1x8x8xf32> to vector<8x8xf32>
    %119 = vector.broadcast %102 : vector<8x1xf32> to vector<8x8xf32>
    %120 = arith.mulf %119, %118 : vector<8x8xf32>
    %121 = arith.addf %120, %116 : vector<8x8xf32>
    %c2_80 = arith.constant 2 : index
    %c0_81 = arith.constant 0 : index
    %c0_82 = arith.constant 0 : index
    %122 = vector.load %arg10[%c2_80, %c0_81, %c0_82] : memref<4x8x8xf32, #tpu.memory_space<vmem>>, vector<1x8x8xf32>
    %123 = vector.shape_cast %122 : vector<1x8x8xf32> to vector<8x8xf32>
    %124 = vector.shape_cast %121 : vector<8x8xf32> to vector<1x8x8xf32>
    tpu.vector_store %arg10[%c2_80, %c0_81, %c0_82], %124 {strides = array<i32>} : memref<4x8x8xf32, #tpu.memory_space<vmem>>, vector<1x8x8xf32>,
    %c2_83 = arith.constant 2 : index
    %c0_84 = arith.constant 0 : index
    %c0_85 = arith.constant 0 : index
    %125 = vector.load %arg8[%c2_83, %c0_84, %c0_85] : memref<4x8x1xf32, #tpu.memory_space<vmem>>, vector<1x8x1xf32>
    %126 = vector.shape_cast %125 : vector<1x8x1xf32> to vector<8x1xf32>
    %127 = vector.shape_cast %100 : vector<8x1xf32> to vector<1x8x1xf32>
    tpu.vector_store %arg8[%c2_83, %c0_84, %c0_85], %127 {strides = array<i32>} : memref<4x8x1xf32, #tpu.memory_space<vmem>>, vector<1x8x1xf32>,
    %128 = vector.extract_strided_slice %8 {offsets = [0, 24], sizes = [8, 8], strides = [1, 1]} : vector<8x32xbf16> to vector<8x8xbf16>
    %129 = vector.extract_strided_slice %10 {offsets = [0, 24], sizes = [8, 8], strides = [1, 1]} : vector<8x32xbf16> to vector<8x8xbf16>
    %c3 = arith.constant 3 : index
    %c0_86 = arith.constant 0 : index
    %c0_87 = arith.constant 0 : index
    %130 = vector.load %arg11[%c3, %c0_86, %c0_87] : memref<4x8x8xbf16, #tpu.memory_space<vmem>>, vector<1x8x8xbf16>
    %131 = vector.shape_cast %130 : vector<1x8x8xbf16> to vector<8x8xbf16>
    %cst_88 = arith.constant dense<0.000000e+00> : vector<8x8xf32>
    %132 = tpu.matmul %131, %128, %cst_88 {dimension_numbers = #tpu.dot_dimension_numbers<[1], [1], [0], [0], [0, 0, 1, 0], [], []>} : vector<8x8xbf16>, vector<8x8xbf16>, vector<8x8xf32> -> vector<8x8xf32>
    %cst_89 = arith.constant -1.000000e+20 : f32
    %133 = vector.broadcast %cst_89 : f32 to vector<8x8xf32>
    %134 = arith.select %6, %133, %132 : vector<8x8xi1>, vector<8x8xf32>
    %c3_90 = arith.constant 3 : index
    %c0_91 = arith.constant 0 : index
    %c0_92 = arith.constant 0 : index
    %135 = vector.load %arg8[%c3_90, %c0_91, %c0_92] : memref<4x8x1xf32, #tpu.memory_space<vmem>>, vector<1x8x1xf32>
    %136 = vector.shape_cast %135 : vector<1x8x1xf32> to vector<8x1xf32>
    %cst_93 = arith.constant dense<0xFF800000> : vector<8xf32>
    %137 = vector.multi_reduction <maximumf>, %134, %cst_93 [1] : vector<8x8xf32> to vector<8xf32>
    %138 = vector.shape_cast %137 : vector<8xf32> to vector<8x1xf32>
    %139 = arith.maximumf %136, %138 : vector<8x1xf32>
    %140 = arith.subf %136, %139 : vector<8x1xf32>
    %141 = math.exp %140 : vector<8x1xf32>
    %142 = vector.broadcast %139 : vector<8x1xf32> to vector<8x8xf32>
    %143 = arith.subf %134, %142 : vector<8x8xf32>
    %144 = math.exp %143 : vector<8x8xf32>
    %c3_94 = arith.constant 3 : index
    %c0_95 = arith.constant 0 : index
    %c0_96 = arith.constant 0 : index
    %145 = vector.load %arg9[%c3_94, %c0_95, %c0_96] : memref<4x8x1xf32, #tpu.memory_space<vmem>>, vector<1x8x1xf32>
    %146 = vector.shape_cast %145 : vector<1x8x1xf32> to vector<8x1xf32>
    %147 = arith.mulf %141, %146 : vector<8x1xf32>
    %cst_97 = arith.constant dense<0.000000e+00> : vector<8xf32>
    %148 = vector.multi_reduction <add>, %144, %cst_97 [1] : vector<8x8xf32> to vector<8xf32>
    %149 = vector.shape_cast %148 : vector<8xf32> to vector<8x1xf32>
    %150 = arith.addf %147, %149 : vector<8x1xf32>
    %c3_98 = arith.constant 3 : index
    %c0_99 = arith.constant 0 : index
    %c0_100 = arith.constant 0 : index
    %151 = vector.load %arg9[%c3_98, %c0_99, %c0_100] : memref<4x8x1xf32, #tpu.memory_space<vmem>>, vector<1x8x1xf32>
    %152 = vector.shape_cast %151 : vector<1x8x1xf32> to vector<8x1xf32>
    %153 = vector.shape_cast %150 : vector<8x1xf32> to vector<1x8x1xf32>
    tpu.vector_store %arg9[%c3_98, %c0_99, %c0_100], %153 {strides = array<i32>} : memref<4x8x1xf32, #tpu.memory_space<vmem>>, vector<1x8x1xf32>,
    %154 = arith.truncf %144 : vector<8x8xf32> to vector<8x8xbf16>
    %cst_101 = arith.constant dense<0.000000e+00> : vector<8x8xf32>
    %155 = tpu.matmul %154, %129, %cst_101 {dimension_numbers = #tpu.dot_dimension_numbers<[1], [0], [0], [1], [0, 0, 1, 1], [], []>} : vector<8x8xbf16>, vector<8x8xbf16>, vector<8x8xf32> -> vector<8x8xf32>
    %c3_102 = arith.constant 3 : index
    %c0_103 = arith.constant 0 : index
    %c0_104 = arith.constant 0 : index
    %156 = vector.load %arg10[%c3_102, %c0_103, %c0_104] : memref<4x8x8xf32, #tpu.memory_space<vmem>>, vector<1x8x8xf32>
    %157 = vector.shape_cast %156 : vector<1x8x8xf32> to vector<8x8xf32>
    %158 = vector.broadcast %141 : vector<8x1xf32> to vector<8x8xf32>
    %159 = arith.mulf %158, %157 : vector<8x8xf32>
    %160 = arith.addf %159, %155 : vector<8x8xf32>
    %c3_105 = arith.constant 3 : index
    %c0_106 = arith.constant 0 : index
    %c0_107 = arith.constant 0 : index
    %161 = vector.load %arg10[%c3_105, %c0_106, %c0_107] : memref<4x8x8xf32, #tpu.memory_space<vmem>>, vector<1x8x8xf32>
    %162 = vector.shape_cast %161 : vector<1x8x8xf32> to vector<8x8xf32>
    %163 = vector.shape_cast %160 : vector<8x8xf32> to vector<1x8x8xf32>
    tpu.vector_store %arg10[%c3_105, %c0_106, %c0_107], %163 {strides = array<i32>} : memref<4x8x8xf32, #tpu.memory_space<vmem>>, vector<1x8x8xf32>,
    %c3_108 = arith.constant 3 : index
    %c0_109 = arith.constant 0 : index
    %c0_110 = arith.constant 0 : index
    %164 = vector.load %arg8[%c3_108, %c0_109, %c0_110] : memref<4x8x1xf32, #tpu.memory_space<vmem>>, vector<1x8x1xf32>
    %165 = vector.shape_cast %164 : vector<1x8x1xf32> to vector<8x1xf32>
    %166 = vector.shape_cast %139 : vector<8x1xf32> to vector<1x8x1xf32>
    tpu.vector_store %arg8[%c3_108, %c0_109, %c0_110], %166 {strides = array<i32>} : memref<4x8x1xf32, #tpu.memory_space<vmem>>, vector<1x8x1xf32>,
    %c0_i32_111 = arith.constant 0 : i32
    %167 = arith.cmpi eq, %arg2, %c0_i32_111 : i32
    %168 = arith.extui %167 : i1 to i32
    %c0_i32_112 = arith.constant 0 : i32
    %169 = arith.cmpi ne, %168, %c0_i32_112 : i32
    scf.if %169 {
      %c0_113 = arith.constant 0 : index
      %c0_114 = arith.constant 0 : index
      %c0_115 = arith.constant 0 : index
      %170 = vector.load %arg9[%c0_113, %c0_114, %c0_115] : memref<4x8x1xf32, #tpu.memory_space<vmem>>, vector<1x8x1xf32>
      %171 = vector.shape_cast %170 : vector<1x8x1xf32> to vector<8x1xf32>
      %172 = tpu.reciprocal %171 {approx = true} : vector<8x1xf32> -> vector<8x1xf32>
      %c0_116 = arith.constant 0 : index
      %c0_117 = arith.constant 0 : index
      %c0_118 = arith.constant 0 : index
      %173 = vector.load %arg10[%c0_116, %c0_117, %c0_118] : memref<4x8x8xf32, #tpu.memory_space<vmem>>, vector<1x8x8xf32>
      %174 = vector.shape_cast %173 : vector<1x8x8xf32> to vector<8x8xf32>
      %175 = vector.broadcast %172 : vector<8x1xf32> to vector<8x8xf32>
      %176 = arith.mulf %174, %175 : vector<8x8xf32>
      %177 = arith.truncf %176 : vector<8x8xf32> to vector<8x8xbf16>
      %c1_119 = arith.constant 1 : index
      %c0_120 = arith.constant 0 : index
      %c0_121 = arith.constant 0 : index
      %178 = vector.load %arg9[%c1_119, %c0_120, %c0_121] : memref<4x8x1xf32, #tpu.memory_space<vmem>>, vector<1x8x1xf32>
      %179 = vector.shape_cast %178 : vector<1x8x1xf32> to vector<8x1xf32>
      %180 = tpu.reciprocal %179 {approx = true} : vector<8x1xf32> -> vector<8x1xf32>
      %c1_122 = arith.constant 1 : index
      %c0_123 = arith.constant 0 : index
      %c0_124 = arith.constant 0 : index
      %181 = vector.load %arg10[%c1_122, %c0_123, %c0_124] : memref<4x8x8xf32, #tpu.memory_space<vmem>>, vector<1x8x8xf32>
      %182 = vector.shape_cast %181 : vector<1x8x8xf32> to vector<8x8xf32>
      %183 = vector.broadcast %180 : vector<8x1xf32> to vector<8x8xf32>
      %184 = arith.mulf %182, %183 : vector<8x8xf32>
      %185 = arith.truncf %184 : vector<8x8xf32> to vector<8x8xbf16>
      %c2_125 = arith.constant 2 : index
      %c0_126 = arith.constant 0 : index
      %c0_127 = arith.constant 0 : index
      %186 = vector.load %arg9[%c2_125, %c0_126, %c0_127] : memref<4x8x1xf32, #tpu.memory_space<vmem>>, vector<1x8x1xf32>
      %187 = vector.shape_cast %186 : vector<1x8x1xf32> to vector<8x1xf32>
      %188 = tpu.reciprocal %187 {approx = true} : vector<8x1xf32> -> vector<8x1xf32>
      %c2_128 = arith.constant 2 : index
      %c0_129 = arith.constant 0 : index
      %c0_130 = arith.constant 0 : index
      %189 = vector.load %arg10[%c2_128, %c0_129, %c0_130] : memref<4x8x8xf32, #tpu.memory_space<vmem>>, vector<1x8x8xf32>
      %190 = vector.shape_cast %189 : vector<1x8x8xf32> to vector<8x8xf32>
      %191 = vector.broadcast %188 : vector<8x1xf32> to vector<8x8xf32>
      %192 = arith.mulf %190, %191 : vector<8x8xf32>
      %193 = arith.truncf %192 : vector<8x8xf32> to vector<8x8xbf16>
      %c3_131 = arith.constant 3 : index
      %c0_132 = arith.constant 0 : index
      %c0_133 = arith.constant 0 : index
      %194 = vector.load %arg9[%c3_131, %c0_132, %c0_133] : memref<4x8x1xf32, #tpu.memory_space<vmem>>, vector<1x8x1xf32>
      %195 = vector.shape_cast %194 : vector<1x8x1xf32> to vector<8x1xf32>
      %196 = tpu.reciprocal %195 {approx = true} : vector<8x1xf32> -> vector<8x1xf32>
      %c3_134 = arith.constant 3 : index
      %c0_135 = arith.constant 0 : index
      %c0_136 = arith.constant 0 : index
      %197 = vector.load %arg10[%c3_134, %c0_135, %c0_136] : memref<4x8x8xf32, #tpu.memory_space<vmem>>, vector<1x8x8xf32>
      %198 = vector.shape_cast %197 : vector<1x8x8xf32> to vector<8x8xf32>
      %199 = vector.broadcast %196 : vector<8x1xf32> to vector<8x8xf32>
      %200 = arith.mulf %198, %199 : vector<8x8xf32>
      %201 = arith.truncf %200 : vector<8x8xf32> to vector<8x8xbf16>
      %202 = tpu.concatenate %177, %185, %193, %201 in 1 : vector<8x8xbf16>, vector<8x8xbf16>, vector<8x8xbf16>, vector<8x8xbf16> -> vector<8x32xbf16>
      %c0_137 = arith.constant 0 : index
      %c0_138 = arith.constant 0 : index
      %c0_139 = arith.constant 0 : index
      %203 = vector.load %arg7[%c0_137, %c0_138, %c0_139] : memref<1x8x32xbf16, #tpu.memory_space<vmem>>, vector<1x8x32xbf16>
      %204 = vector.shape_cast %203 : vector<1x8x32xbf16> to vector<8x32xbf16>
      %205 = vector.shape_cast %202 : vector<8x32xbf16> to vector<1x8x32xbf16>
      tpu.vector_store %arg7[%c0_137, %c0_138, %c0_139], %205 {strides = array<i32>} : memref<1x8x32xbf16, #tpu.memory_space<vmem>>, vector<1x8x32xbf16>,
    } else {
    }
    return
  }
  func.func @transform_0(%arg0: i32, %arg1: i32, %arg2: i32) -> (i32, i32, i32) {
    %c0_i32 = arith.constant 0 : i32
    %c0_i32_0 = arith.constant 0 : i32
    return %arg0, %arg1, %c0_i32 : i32, i32, i32
  }
  func.func @transform_1(%arg0: i32, %arg1: i32, %arg2: i32) -> (i32, i32, i32) {
    %c0_i32 = arith.constant 0 : i32
    %c0_i32_0 = arith.constant 0 : i32
    return %arg0, %arg2, %c0_i32 : i32, i32, i32
  }
  func.func @transform_2(%arg0: i32, %arg1: i32, %arg2: i32) -> (i32, i32, i32) {
    %c0_i32 = arith.constant 0 : i32
    %c0_i32_0 = arith.constant 0 : i32
    return %arg0, %arg2, %c0_i32 : i32, i32, i32
  }
  func.func @transform_3(%arg0: i32, %arg1: i32, %arg2: i32) -> (i32, i32, i32, i32) {
    %c0_i32 = arith.constant 0 : i32
    %c0_i32_0 = arith.constant 0 : i32
    return %arg0, %c0_i32, %arg1, %arg2 : i32, i32, i32, i32
  }
  func.func @transform_4(%arg0: i32, %arg1: i32, %arg2: i32) -> (i32, i32, i32) {
    %c0_i32 = arith.constant 0 : i32
    %c0_i32_0 = arith.constant 0 : i32
    return %arg0, %arg1, %c0_i32 : i32, i32, i32
  }
}

</mosaic_0001>

<bundles_post_ra>
// kernel: tpu_custom_call.1
= control target key start
LH: loop header
LB: loop body
LE: loop exit
PB: predicated region body
PF: predicated region fallthrough
CT: control target
= control target key end

     0   :  { %s2082_s0 = inlined_call_operand.hbm [shape: f32[2,8,32], index: 0, kind: input, shape index: {}]   ;;  %s2083_s1 = inlined_call_operand.hbm [shape: bf16[2,8,32], index: 1, kind: input, shape index: {}]   ;;  %s2084_s2 = inlined_call_operand.hbm [shape: bf16[2,8,32], index: 2, kind: input, shape index: {}]   ;;  %s2085_s3 = inlined_call_operand.hbm [shape: f32[2,1,8,8], index: 3, kind: input, shape index: {}]   ;;  %s2086_s4 = inlined_call_operand.hbm [shape: bf16[2,8,32], index: 4, kind: output, shape index: {}]  }
   0x1   :  { %2097 = sst [smem:[#allocation23_spill]] %s2083_s1 }
   0x2   :  { %9 = vsyncpa [#allocation7], 0 }
   0x3   :  { %11 = vsyncpa [#allocation7 + $0x1], 0 }
   0x4   :  { %12 = vsyncpa [#allocation10], 0 }
   0x5   :  { %14 = vsyncpa [#allocation10 + $0x1], 0 }
   0x6   :  { %15 = vsyncpa [#allocation13], 0 }
   0x7   :  { %17 = vsyncpa [#allocation13 + $0x1], 0 }
   0x8   :  { %18 = vsyncpa [#allocation8], 0 }
   0x9   :  { %20 = vsyncpa [#allocation8 + $0x1], 0  ;;  %s1645_s15 = smov 0   ;;  %s1647_s16 = smov 0  }
   0xa   :  { %s1649_s17 = smov 0   ;;  %s1651_s18 = smov 0  }
   0xb   :  { %s1653_s19 = smov 0   ;;  %s1655_s20 = smov 0  }
   0xc LB: > { %2098 = sst [smem:[#allocation19_spill]] %s1591_s17  ;;  %s1676_s21 = sadd.s32 4294967295, %s1603_s20   ;;  %s1603_s20 = sphi %s1655_s20, %s26_s20   ;;  %s1599_s19 = sphi %s1653_s19, %s2126_s19   ;;  %s1595_s18 = sphi %s1651_s18, %s2125_s18   ;;  %s1591_s17 = sphi %s1649_s17, %s2121_s17   ;;  %s1587_s16 = sphi %s1647_s16, %s2124_s16   ;;  %s1583_s15 = sphi %s1645_s15, %s2123_s15  }
   0xd   : > { %2099 = sst [smem:[#allocation20_spill]] %s1603_s20  ;;  %s1181_s22 = sadd.s32 4294967294, %s1603_s20  }
   0xe   : > { %s45_s23 = sadd.s32 1, %s1599_s19  ;;  %s54_s24 = sadd.s32 1, %s1591_s17 }
   0xf   : > { %p47_p0 = scmp.ge.s32.totalorder %s45_s23, 2  ;;  %p61_p1 = scmp.ne.s32.totalorder %s1591_s17, %s1587_s16 }
  0x10   : > { %p62_p2 = scmp.eq.s32.totalorder %s1603_s20, 0  ;;  %p67_p3 = scmp.ne.s32.totalorder %s1587_s16, %s1583_s15 }
  0x11   : > { %s2128_s23 = smov (%p47_p0, %s45_s23), 0  ;;  %p68_p5 = scmp.eq.s32.totalorder %s1676_s21, 0 }
  0x12   : > { %2100 = sst [smem:[#allocation21_spill]] %s2128_s23  ;;  %p1688_p4 = por %p62_p2, %p61_p1 }
  0x13   : > { %s49_s26 = ssub.s32 %s1599_s19, %s2128_s23  ;;  %p179_p6 = scmp.eq.s32.totalorder %s1676_s21, 1 }
  0x14   : > { %p52_p7 = scmp.eq.s32.totalorder %s49_s26, 0  ;;  %p1696_p8 = por %p68_p5, %p67_p3 }
  0x15   : > { %p1700_p9 = por %p179_p6, %p61_p1  ;;  %p185_p10 = scmp.eq.s32.totalorder %s1181_s22, 1 }
  0x16   : > { %s2102_s27 = scalar_select %p1696_p8, 1, 0 }
  0x17   : > { %s2103_s28 = scalar_select %p1700_p9, 1, 0 }
  0x18   : > { %s1705_s29 = scalar_select %p52_p7, %s1591_s17, %s54_s24  }
  0x19   : > { %p1707_p11 = por %p185_p10, %p67_p3  ;;  %p1305_p13 = scmp.lt.s32.totalorder %s1603_s20, 2 }
  0x1a   : > { %2104 = sst [smem:[#allocation22_spill]] %s1705_s29  ;;  %s1714_s5 = sand.u32 1, %s1591_s17  }
  0x1b   : > { %s2105_s30 = scalar_select %p1707_p11, 1, 0 }
  0x1c   : > { %s224_s6 = sand.u32 1, %s1603_s20   ;;  %s2088_s7 = sshll.u32 %s1714_s5, 2 }
  0x1d   : > { %p1720_p0 = pnand %p1305_p13, %p1688_p4  ;;  %s1187_s9 = sshll.u32 %s1599_s19, 6 }
  0x1e   : > { %s2107_s1 = sld [smem:[#allocation23_spill]]  ;;  %s228_s13 = scalar_lea.vmem [#allocation9], %s2088_s7 }
  0x1f   : > { %s2106_s8 = scalar_select %p1720_p0, 1, 0 }
  0x20   : > { %s236_s14 = sshll.u32 %s228_s13, 4  ;;  %s1737_s25 = scalar_lea.hbm %s2084_s2, %s1187_s9  ;;  %s1732_s14 = int_to_ptr.vmem [resolvable:$true] %s236_s14 }
  0x21   : > { %s1739_s26 = scalar_lea.sflag [#allocation10], %s224_s6  ;;  %p1745_p2 = pneg %p1720_p0 }
  0x24   : > { %s1728_s12 = scalar_lea.hbm %s2107_s1, %s1187_s9  ;;  %s1398_s7 = scalar_lea.hbm %s2107_s1, 128 }
  0x25   : > { %s1393_s23 = scalar_lea.hbm %s1728_s12, 64  ;;  %p1399_p5 = scmp.lt.u32.totalorder %s1728_s12, %s2107_s1 }
  0x26   : > { %p1394_p1 = scmp.ne.s32.totalorder %s1728_s12, %s1393_s23  ;;  %p1400_p6 = scmp.lt.u32.totalorder %s1398_s7, %s1393_s23 }
  0x27   : > { %p1402_p10 = scmp.lt.u32.totalorder %s1393_s23, %s1728_s12 }
  0x28   : > { %p1396_p3 = pnand %p1745_p2, %p1394_p1  ;;  %p1401_p7 = por %p1400_p6, %p1399_p5 }
  0x2a   : > { %p1397_p4 = pneg %p1396_p3  ;;  %p1403_p13 = por %p1402_p10, %p1401_p7 }
  0x2c   : > { %p1404_p12 = pnand %p1403_p13, %p1397_p4 }
  0x2e   : > { %1407 = shalt.err (!%p1404_p12)
}
  0x2f   : > { %s1408_s6 = scalar_lea.vmem %s1732_s14, 64  ;;  %s1605_s24 = smov [#allocation9]  }
  0x30   : > { %p1409_p1 = scmp.ne.s32.totalorder %s1732_s14, %s1408_s6  ;;  %s1413_s11 = sshll.u32 %s1605_s24, 4  ;;  %s1414_s11 = int_to_ptr.vmem [resolvable:$false] %s1413_s11 }
  0x31   : > { %s1415_s13 = scalar_lea.vmem %s1414_s11, 128  ;;  %p1416_p9 = scmp.lt.s32.totalorder %s1732_s14, %s1414_s11 }
  0x32   : > { %p1411_p3 = pnand %p1409_p1, %p1745_p2  ;;  %p1417_p8 = scmp.lt.s32.totalorder %s1415_s13, %s1408_s6 }
  0x34   : > { %p1412_p11 = pneg %p1411_p3  ;;  %p1418_p5 = por %p1417_p8, %p1416_p9 }
  0x36   : > { %p1419_p6 = pnand %p1418_p5, %p1412_p11 }
  0x38   : > { %1422 = shalt.err (!%p1419_p6)
}
  0x39   : > { %1294 = dma.hbm_to_vmem [thread:$0]  (!%p1720_p0), %s1728_s12, 64, %s1732_s14, %s1739_s26  }
  0x3a   : > { %p1192_p12 = scmp.ge.s32.totalorder %s1603_s20, 1  ;;  %p280_p4 = scmp.lt.s32.totalorder %s1603_s20, 3 }
  0x3b   : > { %s2095_s7 = sshll.u32 %s1714_s5, 3  ;;  %s2092_s22 = sshll.u32 %s1599_s19, 7 }
  0x3c   : > { %p1771_p8 = pnand %p1192_p12, %p280_p4  ;;  %s1782_s24 = scalar_lea.hbm %s2082_s0, %s2092_s22 }
  0x3d   : > { %s209_s12 = scalar_lea.vmem [#allocation6], %s2095_s7  ;;  %s2110_s11 = sshll.u32 %s1714_s5, 2 }
  0x3e   : > { %s2109_s23 = scalar_select %p1771_p8, 1, 0 }
  0x3f   : > { %s217_s14 = sshll.u32 %s209_s12, 4  ;;  %s247_s13 = scalar_lea.vmem [#allocation11], %s2110_s11  ;;  %s1788_s14 = int_to_ptr.vmem [resolvable:$true] %s217_s14 }
  0x40   : > { %s255_s1 = sshll.u32 %s247_s13, 4  ;;  %s206_s29 = scalar_lea.sflag [#allocation7], %s1714_s5  ;;  %s1790_s1 = int_to_ptr.vmem [resolvable:$true] %s255_s1 }
  0x41   : > { %s1423_s17 = scalar_lea.hbm %s1782_s24, 128  ;;  %s1428_s22 = scalar_lea.hbm %s2082_s0, 256 }
  0x42   : > { %p1424_p9 = scmp.ne.s32.totalorder %s1782_s24, %s1423_s17  ;;  %p1429_p10 = scmp.lt.u32.totalorder %s1782_s24, %s2082_s0 }
  0x43   : > { %p1430_p13 = scmp.lt.u32.totalorder %s1428_s22, %s1423_s17  ;;  %p1432_p3 = scmp.lt.u32.totalorder %s1423_s17, %s1782_s24 }
  0x44   : > { %p1426_p11 = pnand %p1424_p9, %p1745_p2 }
  0x45   : > { %p1431_p1 = por %p1430_p13, %p1429_p10 }
  0x46   : > { %p1427_p7 = pneg %p1426_p11 }
  0x47   : > { %p1433_p5 = por %p1432_p3, %p1431_p1 }
  0x49   : > { %p1434_p6 = pnand %p1433_p5, %p1427_p7 }
  0x4b   : > { %1437 = shalt.err (!%p1434_p6)
}
  0x4c   : > { %s1438_s12 = scalar_lea.vmem %s1788_s14, 128  ;;  %s1606_s11 = smov [#allocation6]  }
  0x4d   : > { %p1439_p12 = scmp.ne.s32.totalorder %s1788_s14, %s1438_s12  ;;  %s1443_s13 = sshll.u32 %s1606_s11, 4  ;;  %s1444_s13 = int_to_ptr.vmem [resolvable:$false] %s1443_s13 }
  0x4e   : > { %s1445_s20 = scalar_lea.vmem %s1444_s13, 256  ;;  %p1446_p11 = scmp.lt.s32.totalorder %s1788_s14, %s1444_s13 }
  0x4f   : > { %p1441_p4 = pnand %p1439_p12, %p1745_p2  ;;  %p1447_p8 = scmp.lt.s32.totalorder %s1445_s20, %s1438_s12 }
  0x51   : > { %p1442_p9 = pneg %p1441_p4  ;;  %p1448_p10 = por %p1447_p8, %p1446_p11 }
  0x53   : > { %p1449_p13 = pnand %p1448_p10, %p1442_p9 }
  0x55   : > { %1452 = shalt.err (!%p1449_p13)
}
  0x56   : > { %1291 = dma.hbm_to_vmem [thread:$0]  (!%p1720_p0), %s1782_s24, 128, %s1788_s14, %s206_s29  }
  0x57   : > { %s1453_s17 = scalar_lea.hbm %s1737_s25, 64  ;;  %s1458_s9 = scalar_lea.hbm %s2084_s2, 128 }
  0x58   : > { %p1454_p7 = scmp.ne.s32.totalorder %s1737_s25, %s1453_s17  ;;  %p1459_p8 = scmp.lt.u32.totalorder %s1737_s25, %s2084_s2 }
  0x59   : > { %p1460_p5 = scmp.lt.u32.totalorder %s1458_s9, %s1453_s17  ;;  %p1462_p12 = scmp.lt.u32.totalorder %s1453_s17, %s1737_s25 }
  0x5a   : > { %p1456_p1 = pnand %p1454_p7, %p1745_p2 }
  0x5b   : > { %p1461_p6 = por %p1460_p5, %p1459_p8 }
  0x5c   : > { %p1457_p3 = pneg %p1456_p1 }
  0x5d   : > { %p1463_p4 = por %p1462_p12, %p1461_p6 }
  0x5f   : > { %p1464_p9 = pnand %p1463_p4, %p1457_p3 }
  0x61   : > { %1467 = shalt.err (!%p1464_p9)
}
  0x62   : > { %s1468_s29 = scalar_lea.vmem %s1790_s1, 64  ;;  %s1607_s24 = smov [#allocation11]  }
  0x63   : > { %p1469_p11 = scmp.ne.s32.totalorder %s1790_s1, %s1468_s29  ;;  %s1473_s14 = sshll.u32 %s1607_s24, 4  ;;  %s1474_s14 = int_to_ptr.vmem [resolvable:$false] %s1473_s14 }
  0x64   : > { %s1475_s11 = scalar_lea.vmem %s1474_s14, 128  ;;  %p1476_p7 = scmp.lt.s32.totalorder %s1790_s1, %s1474_s14 }
  0x65   : > { %p1471_p10 = pnand %p1469_p11, %p1745_p2  ;;  %p1477_p1 = scmp.lt.s32.totalorder %s1475_s11, %s1468_s29 }
  0x67   : > { %p1472_p13 = pneg %p1471_p10  ;;  %p1478_p8 = por %p1477_p1, %p1476_p7 }
  0x69   : > { %p1479_p5 = pnand %p1478_p8, %p1472_p13 }
  0x6b   : > { %1482 = shalt.err (!%p1479_p5)
}
  0x6c   : > { %1297 = dma.hbm_to_vmem [thread:$0]  (!%p1720_p0), %s1737_s25, 64, %s1790_s1, %s1739_s26  }
  0x6d   : > { %s2111_s13 = sshll.u32 %s1599_s19, 7  ;;  %s2112_s22 = sshll.u32 %s1714_s5, 3 }
  0x6e   : > { %s1841_s7 = scalar_lea.hbm %s2085_s3, %s2111_s13  ;;  %s266_s9 = scalar_lea.vmem [#allocation12], %s2112_s22 }
  0x6f   : > { %s275_s6 = sshll.u32 %s266_s9, 4  ;;  %s263_s12 = scalar_lea.sflag [#allocation13], %s1714_s5  ;;  %s276_s6 = int_to_ptr.vmem [resolvable:$true] %s275_s6 }
  0x70   : > { %s1483_s29 = scalar_lea.hbm %s1841_s7, 128  ;;  %s1488_s26 = scalar_lea.hbm %s2085_s3, 256 }
  0x71   : > { %p1484_p3 = scmp.ne.s32.totalorder %s1841_s7, %s1483_s29  ;;  %p1489_p4 = scmp.lt.u32.totalorder %s1841_s7, %s2085_s3 }
  0x72   : > { %p1490_p9 = scmp.lt.u32.totalorder %s1488_s26, %s1483_s29  ;;  %p1492_p10 = scmp.lt.u32.totalorder %s1483_s29, %s1841_s7 }
  0x73   : > { %p1486_p6 = pnand %p1484_p3, %p1745_p2 }
  0x74   : > { %p1491_p11 = por %p1490_p9, %p1489_p4 }
  0x75   : > { %p1487_p12 = pneg %p1486_p6 }
  0x76   : > { %p1493_p13 = por %p1492_p10, %p1491_p11 }
  0x78   : > { %p1494_p7 = pnand %p1493_p13, %p1487_p12 }
  0x7a   : > { %1497 = shalt.err (!%p1494_p7)
}
  0x7b   : > { %s1498_s5 = scalar_lea.vmem %s276_s6, 128  ;;  %s1608_s11 = smov [#allocation12]  }
  0x7c   : > { %p1499_p1 = scmp.ne.s32.totalorder %s276_s6, %s1498_s5  ;;  %s1503_s13 = sshll.u32 %s1608_s11, 4  ;;  %s1504_s13 = int_to_ptr.vmem [resolvable:$false] %s1503_s13 }
  0x7d   : > { %s1505_s20 = scalar_lea.vmem %s1504_s13, 256  ;;  %p1506_p3 = scmp.lt.s32.totalorder %s276_s6, %s1504_s13 }
  0x7e   : > { %p1501_p8 = pnand %p1499_p1, %p1745_p2  ;;  %p1507_p6 = scmp.lt.s32.totalorder %s1505_s20, %s1498_s5 }
  0x80   : > { %p1502_p5 = pneg %p1501_p8  ;;  %p1508_p0 = por %p1507_p6, %p1506_p3 }
  0x82   : > { %p1509_p4 = pnand %p1508_p0, %p1502_p5 }
  0x84   : > { %1512 = shalt.err (!%p1509_p4)
}
  0x85   : > { %p2113_p9 = scmp.ne.s32.totalorder %s2106_s8, 0  ;;  %p2114_p12 = scmp.ne.s32.totalorder %s2109_s23, 0 }
  0x86   : > { %s1866_s10 = sand.u32 (!%p2114_p12), 1, %s1587_s16   ;;  %p2115_p2 = scmp.ne.s32.totalorder (!%p2114_p12), %s2102_s27, 0 }
  0x87   : > { %1300 = dma.hbm_to_vmem [thread:$0]  (!%p2113_p9), %s1841_s7, 128, %s276_s6, %s263_s12  }
  0x88   : > { %284 = sbr.rel (%p2114_p12) target bundleno = 1618 (0x652), region = 36  ;;  %s1193_s17 = sshll.u32 (!%p2114_p12), %s1866_s10, 3 }
  0x89   : > { %s287_s22 = scalar_lea.sflag (!%p2114_p12), [#allocation7], %s1866_s10  ;;  %s290_s9 = scalar_lea.vmem (!%p2114_p12), [#allocation6], %s1193_s17 }
  0x8f   : > { %1566 = dma.done.wait (%p2115_p2), %s287_s22, 128  }
  0x90   : > { %1568 = vsyncadd (%p2115_p2), %s287_s22, 4294967168  ;;  %s295_s8 = sand.u32 1, %s1676_s21   ;;  %s1876_s23 = sshll.u32 %s1866_s10, 2 }
  0x91   : > { %s296_s7 = scalar_lea.sflag [#allocation10], %s295_s8  ;;  %s299_s6 = scalar_lea.vmem [#allocation9], %s1876_s23 }
  0x92   : > { %1570 = dma.done.wait (%p2115_p2), %s296_s7, 128  }
  0x93   : > { %1572 = vsyncadd (%p2115_p2), %s296_s7, 4294967168  ;;  %s308_s12 = scalar_lea.vmem [#allocation11], %s1876_s23  ;;  %s314_s29 = scalar_lea.sflag [#allocation13], %s1866_s10 }
  0x94   : > { %s1885_s1 = scalar_lea.vmem [#allocation12], %s1193_s17 }
  0x95   : > { %1574 = dma.done.wait (%p2115_p2), %s314_s29, 128  }
  0x96   : > { %1576 = vsyncadd (%p2115_p2), %s314_s29, 4294967168  ;;  %vm394_vm0 = vcmask 64512   ;;  %v1609_v0 = vmov 0.0   ;;  %vm1610_vm1 = vmmov 0   ;;  %v401_v1 = vld [vmem:[%s299_s6] sm:$0xf] }
  0x97   : > { %1230 = vmatprep.subr.bf16.mxu0 %v1609_v0  ;;  %395 = vst.msk [vmem:[#allocation4] sm:$0xff] %vm394_vm0, %v1609_v0  ;;  %396 = vst.msk [vmem:[#allocation4 + $0x8] sm:$0xff] %vm394_vm0, %v1609_v0  ;;  %1232 = vmatprep.mubr.msk.bf16.mxu0 %vm1610_vm1, %v1609_v0  ;;  %v362_v2 = vld [vmem:[%s290_s9] sm:$0xff]  ;;  %v409_v3 = vsel %vm394_vm0, %v401_v1, 0  ;;  %vm365_vm2 = vcmask 60416   ;;  %vm385_vm3 = vcmask 7168   ;;  %v1201_v16 = vcombine.low %v401_v1, %v401_v1 }
  0x98   : > { %397 = vst.msk [vmem:[#allocation4 + $0x10] sm:$0xff] %vm394_vm0, %v1609_v0  ;;  %398 = vst.msk [vmem:[#allocation4 + $0x18] sm:$0xff] %vm394_vm0, %v1609_v0  ;;  %1236 = vmatprep.subr.bf16.mxu1 %v1609_v0  ;;  %1238 = vmatprep.mubr.msk.bf16.mxu1 %vm1610_vm1, %v1609_v0  ;;  %v363_v4 = vmul.f32 0.35355338, %v362_v2  ;;  %v1611_v7 = vmov -inf   ;;  %v1924_v8 = vld [vmem:[%s1885_s1] sm:$0xff] }
  0x99   : > { %1231 = vmatpush3.bf16.xpose.msra.mxu0 %v409_v3  ;;  %386 = vst.msk [vmem:[#allocation2] sm:$0xff] %vm385_vm3, %v1611_v7  ;;  %387 = vst.msk [vmem:[#allocation2 + $0x8] sm:$0xff] %vm385_vm3, %v1611_v7  ;;  %vm400_vm4 = vcmp.eq.f32.partialorder %v1924_v8, 0.0  ;;  %v1612_v15 = vmov 0   ;;  %s1613_s21 = smov 120   ;;  %s1614_s27 = smov 112  }
  0x9a   : > { %v364_v5 = vpack.c.bf16 %v363_v4, %v363_v4  ;;  %1248 = vmatprep.subr.bf16.mxu0 %v1609_v0  ;;  %388 = vst.msk [vmem:[#allocation2 + $0x10] sm:$0xff] %vm385_vm3, %v1611_v7  ;;  %389 = vst.msk [vmem:[#allocation2 + $0x18] sm:$0xff] %vm385_vm3, %v1611_v7  ;;  %1365 = vset.pattern.permute.xlu0 %v1612_v15  ;;  %s1615_s25 = smov 104   ;;  %v1948_v21 = vld [vmem:[%s308_s12] sm:$0xf]  ;;  %vm480_vm5 = vcmask 1043456  }
  0x9b   : > { %390 = vst.msk [vmem:[#allocation3] sm:$0xff] %vm385_vm3, %v1609_v0  ;;  %391 = vst.msk [vmem:[#allocation3 + $0x8] sm:$0xff] %vm385_vm3, %v1609_v0  ;;  %1366 = vset.pattern.permute.xlu1 %v1612_v15  ;;  %v482_v23 = vsel %vm480_vm5, %v1948_v21, 0  ;;  %s1616_s26 = smov 8   ;;  %s1617_s24 = smov 16   ;;  %vm1003_vm6 = vcmask 130048  }
  0x9c   : > { %366 = vst.msk [vmem:[#allocation5] sm:$0xf] %vm365_vm2, %v364_v5  ;;  %370 = vrot.lane.b32.xlu1 %v364_v5, %s1613_s21  ;;  %1237 = vmatpush3.bf16.msra.mxu1 %v482_v23  ;;  %s1618_s14 = smov 24   ;;  %s1210_s5 = sshll.u32 %s1595_s18, 6  ;;  %vm1006_vm7 = vcmask 195584   ;;  %vm1010_vm8 = vcmask 257024  }
  0x9d   : > { %392 = vst.msk [vmem:[#allocation3 + $0x10] sm:$0xff] %vm385_vm3, %v1609_v0  ;;  %393 = vst.msk [vmem:[#allocation3 + $0x18] sm:$0xff] %vm385_vm3, %v1609_v0  ;;  %1242 = vmatprep.subr.bf16.mxu1 %v1609_v0  ;;  %s356_s11 = scalar_lea.vmem [#allocation14], %s1876_s23  ;;  %s2033_s22 = scalar_lea.hbm %s2086_s4, %s1210_s5 }
  0x9e   : > { %s1027_s13 = sshll.u32 %s356_s11, 4  ;;  %s1013_s18 = scalar_lea.sflag [#allocation8], %s1866_s10  ;;  %s2035_s13 = int_to_ptr.vmem [resolvable:$true] %s1027_s13 }
  0x9f   : > { %s1513_s9 = scalar_lea.vmem %s2035_s13, 64  ;;  %p2116_p11 = scmp.ne.s32.totalorder %s2103_s28, 0 }
  0xa0   : > { %539 = vrot.lane.b32.xlu1 %v1201_v16, %s1613_s21  ;;  %v1936_v17 = vld [vmem:[#allocation2] sm:$0xff]  ;;  %v1986_v62 = vld [vmem:[#allocation2 + $0x8] sm:$0xff]  ;;  %p1514_p0 = scmp.ne.s32.totalorder %s2035_s13, %s1513_s9  ;;  %s1619_s8 = smov [#allocation14]  }
  0xa1   : > { %v728_v3 = vld [vmem:[#allocation2 + $0x10] sm:$0xff]  ;;  %v864_v7 = vld [vmem:[#allocation2 + $0x18] sm:$0xff]  ;;  %s1517_s23 = sshll.u32 %s1619_s8, 4  ;;  %s1518_s23 = int_to_ptr.vmem [resolvable:$false] %s1517_s23 }
  0xa2   : > { %p1515_p10 = pnand %p1514_p0, %p2116_p11  ;;  %s1519_s7 = scalar_lea.vmem %s1518_s23, 128 }
  0xa3   : > { %v403_v6 = vld [vmem:[#allocation5] sm:$0xf]  ;;  %p1520_p7 = scmp.lt.s32.totalorder %s2035_s13, %s1518_s23  ;;  %p1521_p1 = scmp.lt.s32.totalorder %s1519_s7, %s1513_s9 }
  0xa4   : > { %1233 = vmatmul.mubr.msk.bf16.vlgmr.msra.gmra.mrb[0].mxu0 %vm394_vm0, %v403_v6  ;;  %375 = vrot.lane.b32.xlu1 %v364_v5, %s1614_s27  ;;  %p1516_p13 = pneg %p1515_p10 }
  0xa5   : > { %1250 = vmatprep.mubr.msk.bf16.mxu0 %vm1610_vm1, %v1609_v0  ;;  %p1522_p8 = por %p1521_p1, %p1520_p7 }
  0xa7   : > { %p1523_p5 = pnand %p1522_p8, %p1516_p13 }
  0xa8   : > { %678 = vrot.lane.b32.xlu1 %v1201_v16, %s1614_s27 }
  0xac   : > { %380 = vrot.lane.b32.xlu1 %v364_v5, %s1615_s25 }
  0xb0   : > { %814 = vrot.lane.b32.xlu1 %v1201_v16, %s1615_s25 }
 0x10e   : > { %v371_v22 = vpop.permute.xlu1 %370 }
 0x10f   : > { %374 = vst.msk [vmem:[#allocation5 + $0x4] sm:$0xf] %vm365_vm2, %v371_v22 }
 0x112   : > { %v540_v24 = vpop.permute.xlu1 %539 }
 0x113   : > { %v545_v32 = vsel %vm394_vm0, %v540_v24, 0 }
 0x116   : > { %v376_v25 = vpop.permute.xlu1 %375  ;;  %v535_v35 = vld [vmem:[#allocation5 + $0x4] sm:$0xf] }
 0x117   : > { %379 = vst.msk [vmem:[#allocation5 + $0x8] sm:$0xf] %vm365_vm2, %v376_v25 }
 0x11a   : > { %v679_v26 = vpop.permute.xlu1 %678 }
 0x11b   : > { %v684_v34 = vsel %vm394_vm0, %v679_v26, 0 }
 0x11e   : > { %v381_v27 = vpop.permute.xlu1 %380  ;;  %v677_v38 = vld [vmem:[#allocation5 + $0x8] sm:$0xf] }
 0x11f   : > { %384 = vst.msk [vmem:[#allocation5 + $0xc] sm:$0xf] %vm365_vm2, %v381_v27 }
 0x122   : > { %v815_v36 = vpop.permute.xlu1 %814 }
 0x123   : > { %v820_v37 = vsel %vm394_vm0, %v815_v36, 0 }
 0x126   : > { %v813_v39 = vld [vmem:[#allocation5 + $0xc] sm:$0xf] }
 0x177   : > { %v445_v9 = vpop.f32.mrb[0].mxu0 }
 0x178   : > { %v451_v10 = vsel %vm400_vm4, -1e+20, %v445_v9  ;;  %v1234_v11 = vpop.f32.mrb[1].mxu0 }
 0x179   : > { %v448_v12 = vpop.f32.mrb[2].mxu0  ;;  %v453_v13 = vsel %vm394_vm0, %v451_v10, -inf }
 0x17a   : > { %454 = vmax.xlane.f32.xlu0 %v453_v13  ;;  %v1235_v14 = vpop.f32.mrb[3].mxu0 }
 0x207   : > { %v455_v18 = vpop.xlane.xlu0 %454 }
 0x208   : > { %v1939_v19 = vmax.f32 %v1936_v17, %v455_v18 }
 0x20a   : > { %v457_v20 = vsub.f32 %v1936_v17, %v1939_v19  ;;  %533 = vst.msk [vmem:[#allocation2] sm:$0xff] %vm385_vm3, %v1939_v19  ;;  %462 = vperm.xlu0 %1365, %v1939_v19  }
 0x289   : > { %v463_v28 = vpop.permute.xlu0 %462 }
 0x28a   : > { %v465_v29 = vsub.f32 %v451_v10, %v463_v28  ;;  %v1203_v10 = vcombine.low %v1948_v21, %v1948_v21 }
 0x28c   : > { %v466_v30 = vmul.f32 1.442695, %v465_v29 }
 0x28e   : > { %1369 = vpow2.f32 %v466_v30 }
 0x298   : > { %v1956_v31 = vpop.eup %1369 }
 0x299   : > { %v476_v33 = vpack.c.bf16 %v1956_v31, %v1956_v31  ;;  %v470_v12 = vsel %vm394_vm0, %v1956_v31, 0.0 }
 0x29b   : > { %1239 = vmatmul.mubr.msk.bf16.vlgmr.msra.gmra.mrb[0].mxu1 %vm394_vm0, %v476_v33 }
 0x29c   : > { %1243 = vmatpush3.bf16.xpose.msra.mxu1 %v545_v32  ;;  %1244 = vmatprep.mubr.msk.bf16.mxu1 %vm1610_vm1, %v1609_v0 }
 0x29d   : > { %1254 = vmatprep.subr.bf16.mxu1 %v1609_v0 }
 0x2a3   : > { %1245 = vmatmul.mubr.msk.bf16.vlgmr.msra.gmra.mrb[4].mxu1 %vm394_vm0, %v535_v35 }
 0x2a4   : > { %1255 = vmatpush3.bf16.xpose.msra.mxu1 %v684_v34  ;;  %1256 = vmatprep.mubr.msk.bf16.mxu1 %vm1610_vm1, %v1609_v0 }
 0x2a5   : > { %1266 = vmatprep.subr.bf16.mxu1 %v1609_v0 }
 0x2ab   : > { %1257 = vmatmul.mubr.msk.bf16.vlgmr.msra.gmra.mrb[8].mxu1 %vm394_vm0, %v677_v38  ;;  %v458_v38 = vmul.f32 1.442695, %v457_v20 }
 0x2ac   : > { %1267 = vmatpush3.bf16.xpose.msra.mxu1 %v820_v37  ;;  %1268 = vmatprep.mubr.msk.bf16.mxu1 %vm1610_vm1, %v1609_v0 }
 0x2b3   : > { %1269 = vmatmul.mubr.msk.bf16.vlgmr.msra.gmra.mrb[12].mxu1 %vm394_vm0, %v813_v39 }
 0x36e   : > { %v1975_v40 = vpop.f32.mrb[0].mxu1 }
 0x36f   : > { %v1240_v41 = vpop.f32.mrb[1].mxu1 }
 0x370   : > { %v521_v42 = vpop.f32.mrb[2].mxu1 }
 0x371   : > { %v1241_v43 = vpop.f32.mrb[3].mxu1 }
 0x376   : > { %v581_v44 = vpop.f32.mrb[4].mxu1 }
 0x377   : > { %v587_v45 = vsel %vm400_vm4, -1e+20, %v581_v44  ;;  %v1246_v46 = vpop.f32.mrb[5].mxu1 }
 0x378   : > { %v584_v47 = vpop.f32.mrb[6].mxu1  ;;  %v590_v48 = vsel %vm394_vm0, %v587_v45, -inf  ;;  %v468_v46 = vld [vmem:[#allocation3] sm:$0xff] }
 0x379   : > { %591 = vmax.xlane.f32.xlu1 %v590_v48  ;;  %v1247_v49 = vpop.f32.mrb[7].mxu1 }
 0x37e   : > { %v720_v50 = vpop.f32.mrb[8].mxu1 }
 0x37f   : > { %v726_v51 = vsel %vm400_vm4, -1e+20, %v720_v50  ;;  %v1258_v52 = vpop.f32.mrb[9].mxu1 }
 0x380   : > { %v723_v53 = vpop.f32.mrb[10].mxu1  ;;  %v729_v54 = vsel %vm394_vm0, %v726_v51, -inf }
 0x381   : > { %730 = vmax.xlane.f32.xlu0 %v729_v54  ;;  %v1259_v55 = vpop.f32.mrb[11].mxu1 }
 0x382   : > { %v745_v55 = vld [vmem:[#allocation3 + $0x10] sm:$0xff] }
 0x386   : > { %v856_v56 = vpop.f32.mrb[12].mxu1 }
 0x387   : > { %v862_v57 = vsel %vm400_vm4, -1e+20, %v856_v56  ;;  %v1270_v58 = vpop.f32.mrb[13].mxu1 }
 0x388   : > { %v859_v59 = vpop.f32.mrb[14].mxu1  ;;  %v865_v60 = vsel %vm394_vm0, %v862_v57, -inf }
 0x389   : > { %866 = vmax.xlane.f32.xlu1 %v865_v60  ;;  %v1271_v61 = vpop.f32.mrb[15].mxu1  ;;  %v881_v60 = vld [vmem:[#allocation3 + $0x18] sm:$0xff] }
 0x38a   : > { %v524_v61 = vld [vmem:[#allocation4] sm:$0xff] }
 0x406   : > { %v592_v63 = vpop.xlane.xlu1 %591 }
 0x407   : > { %v593_v1 = vmax.f32 %v1986_v62, %v592_v63 }
 0x409   : > { %v594_v2 = vsub.f32 %v1986_v62, %v593_v1  ;;  %675 = vst.msk [vmem:[#allocation2 + $0x8] sm:$0xff] %vm385_vm3, %v593_v1  ;;  %599 = vperm.xlu1 %1366, %v593_v1  }
 0x40b   : > { %v595_v41 = vmul.f32 1.442695, %v594_v2 }
 0x40e   : > { %v731_v4 = vpop.xlane.xlu0 %730 }
 0x40f   : > { %v732_v5 = vmax.f32 %v728_v3, %v731_v4 }
 0x411   : > { %v733_v6 = vsub.f32 %v728_v3, %v732_v5  ;;  %811 = vst.msk [vmem:[#allocation2 + $0x10] sm:$0xff] %vm385_vm3, %v732_v5  ;;  %738 = vperm.xlu0 %1365, %v732_v5  }
 0x413   : > { %v734_v43 = vmul.f32 1.442695, %v733_v6 }
 0x416   : > { %v867_v8 = vpop.xlane.xlu1 %866 }
 0x417   : > { %v868_v9 = vmax.f32 %v864_v7, %v867_v8 }
 0x419   : > { %v869_v11 = vsub.f32 %v864_v7, %v868_v9  ;;  %947 = vst.msk [vmem:[#allocation2 + $0x18] sm:$0xff] %vm385_vm3, %v868_v9  ;;  %874 = vperm.xlu1 %1366, %v868_v9  }
 0x41b   : > { %v870_v42 = vmul.f32 1.442695, %v869_v11 }
 0x41d   : > { %617 = vrot.lane.b32.xlu1 %v1203_v10, %s1613_s21 }
 0x421   : > { %753 = vrot.lane.b32.xlu1 %v1203_v10, %s1614_s27 }
 0x425   : > { %889 = vrot.lane.b32.xlu1 %v1203_v10, %s1615_s25  ;;  %v666_v10 = vld [vmem:[#allocation4 + $0x8] sm:$0xff] }
 0x449   : > { %471 = vadd.xlane.f32.xlu1 %v470_v12 }
 0x488   : > { %v600_v13 = vpop.permute.xlu1 %599 }
 0x489   : > { %v602_v14 = vsub.f32 %v587_v45, %v600_v13 }
 0x48b   : > { %v603_v15 = vmul.f32 1.442695, %v602_v14 }
 0x48d   : > { %1371 = vpow2.f32 %v603_v15 }
 0x490   : > { %v739_v16 = vpop.permute.xlu0 %738 }
 0x491   : > { %v741_v18 = vsub.f32 %v726_v51, %v739_v16  ;;  %v606_v51 = vld [vmem:[#allocation3 + $0x8] sm:$0xff] }
 0x493   : > { %v742_v21 = vmul.f32 1.442695, %v741_v18  ;;  %v802_v18 = vld [vmem:[#allocation4 + $0x10] sm:$0xff] }
 0x495   : > { %1373 = vpow2.f32 %v742_v21 }
 0x497   : > { %v1372_v22 = vpop.eup %1371 }
 0x498   : > { %v875_v23 = vpop.permute.xlu1 %874  ;;  %v608_v24 = vsel %vm394_vm0, %v1372_v22, 0.0  ;;  %v613_v30 = vpack.c.bf16 %v1372_v22, %v1372_v22 }
 0x499   : > { %v877_v25 = vsub.f32 %v862_v57, %v875_v23  ;;  %609 = vadd.xlane.f32.xlu0 %v608_v24 }
 0x49b   : > { %v878_v26 = vmul.f32 1.442695, %v877_v25 }
 0x49c   : > { %v618_v27 = vpop.permute.xlu1 %617 }
 0x49d   : > { %1375 = vpow2.f32 %v878_v26  ;;  %v623_v28 = vsel %vm480_vm5, %v618_v27, 0 }
 0x49e   : > { %1249 = vmatpush3.bf16.msra.mxu0 %v623_v28  ;;  %1377 = vpow2.f32 %v458_v38  ;;  %v938_v28 = vld [vmem:[#allocation4 + $0x18] sm:$0xff] }
 0x49f   : > { %v1374_v29 = vpop.eup %1373  ;;  %1260 = vmatprep.subr.bf16.mxu0 %v1609_v0  ;;  %1379 = vpow2.f32 %v595_v41 }
 0x4a0   : > { %v747_v31 = vsel %vm394_vm0, %v1374_v29, 0.0  ;;  %v754_v32 = vpop.permute.xlu1 %753  ;;  %v752_v36 = vpack.c.bf16 %v1374_v29, %v1374_v29  ;;  %1381 = vpow2.f32 %v870_v42 }
 0x4a1   : > { %748 = vadd.xlane.f32.xlu0 %v747_v31  ;;  %1251 = vmatmul.mubr.msk.bf16.vlgmr.msra.gmra.mrb[4].mxu0 %vm394_vm0, %v613_v30  ;;  %v759_v33 = vsel %vm480_vm5, %v754_v32, 0  ;;  %1383 = vpow2.f32 %v734_v43 }
 0x4a2   : > { %1261 = vmatpush3.bf16.msra.mxu0 %v759_v33  ;;  %1262 = vmatprep.mubr.msk.bf16.mxu0 %vm1610_vm1, %v1609_v0 }
 0x4a3   : > { %1272 = vmatprep.subr.bf16.mxu0 %v1609_v0 }
 0x4a4   : > { %v890_v34 = vpop.permute.xlu1 %889 }
 0x4a5   : > { %v895_v37 = vsel %vm480_vm5, %v890_v34, 0 }
 0x4a7   : > { %v1376_v35 = vpop.eup %1375 }
 0x4a8   : > { %v883_v39 = vsel %vm394_vm0, %v1376_v35, 0.0  ;;  %v888_v44 = vpack.c.bf16 %v1376_v35, %v1376_v35  ;;  %v1378_v17 = vpop.eup %1377 }
 0x4a9   : > { %1263 = vmatmul.mubr.msk.bf16.vlgmr.msra.gmra.mrb[8].mxu0 %vm394_vm0, %v752_v36  ;;  %884 = vadd.xlane.f32.xlu1 %v883_v39  ;;  %v1380_v19 = vpop.eup %1379 }
 0x4aa   : > { %1273 = vmatpush3.bf16.msra.mxu0 %v895_v37  ;;  %1274 = vmatprep.mubr.msk.bf16.mxu0 %vm1610_vm1, %v1609_v0  ;;  %v1382_v20 = vpop.eup %1381  ;;  %v469_v0 = vmul.f32 %v1378_v17, %v468_v46  ;;  %v607_v52 = vmul.f32 %v1380_v19, %v606_v51 }
 0x4ab   : > { %v1384_v45 = vpop.eup %1383  ;;  %v882_v62 = vmul.f32 %v1382_v20, %v881_v60 }
 0x4ac   : > { %v746_v56 = vmul.f32 %v1384_v45, %v745_v55 }
 0x4b1   : > { %1275 = vmatmul.mubr.msk.bf16.vlgmr.msra.gmra.mrb[12].mxu0 %vm394_vm0, %v888_v44 }
 0x4b7   : > { %527 = vperm.xlu0 %1365, %v1378_v17  }
 0x4ba   : > { %669 = vperm.xlu1 %1366, %v1380_v19  }
 0x4bb   : > { %941 = vperm.xlu0 %1365, %v1382_v20  }
 0x4be   : > { %805 = vperm.xlu1 %1366, %v1384_v45  }
 0x4d6   : > { %v472_v47 = vpop.xlane.xlu1 %471 }
 0x4d7   : > { %v473_v48 = vadd.f32 %v472_v47, %v469_v0 }
 0x4d9   : > { %475 = vst.msk [vmem:[#allocation3] sm:$0xff] %vm385_vm3, %v473_v48 }
 0x4e0   : > { %v951_v49 = vld [vmem:[#allocation3] sm:$0xff] }
 0x4e1   : > { %1385 = vrcp.f32 %v951_v49 }
 0x4eb   : > { %v1386_v50 = vpop.eup %1385 }
 0x4ec   : > { %956 = vperm.xlu1 %1366, %v1386_v50  }
 0x526   : > { %v610_v53 = vpop.xlane.xlu0 %609 }
 0x527   : > { %v611_v54 = vadd.f32 %v610_v53, %v607_v52 }
 0x529   : > { %612 = vst.msk [vmem:[#allocation3 + $0x8] sm:$0xff] %vm385_vm3, %v611_v54 }
 0x52e   : > { %v749_v57 = vpop.xlane.xlu0 %748 }
 0x52f   : > { %v750_v58 = vadd.f32 %v749_v57, %v746_v56 }
 0x530   : > { %v961_v59 = vld [vmem:[#allocation3 + $0x8] sm:$0xff] }
 0x531   : > { %751 = vst.msk [vmem:[#allocation3 + $0x10] sm:$0xff] %vm385_vm3, %v750_v58  ;;  %1387 = vrcp.f32 %v961_v59 }
 0x536   : > { %v885_v63 = vpop.xlane.xlu1 %884  ;;  %v528_v1 = vpop.permute.xlu0 %527 }
 0x537   : > { %v886_v2 = vadd.f32 %v885_v63, %v882_v62  ;;  %v530_v3 = vmul.f32 %v528_v1, %v524_v61 }
 0x538   : > { %v971_v4 = vld [vmem:[#allocation3 + $0x10] sm:$0xff] }
 0x539   : > { %887 = vst.msk [vmem:[#allocation3 + $0x18] sm:$0xff] %vm385_vm3, %v886_v2  ;;  %v531_v5 = vadd.f32 %v530_v3, %v1975_v40  ;;  %1389 = vrcp.f32 %v971_v4 }
 0x53a   : > { %v670_v11 = vpop.permute.xlu1 %669  ;;  %v942_v29 = vpop.permute.xlu0 %941 }
 0x53b   : > { %v1388_v6 = vpop.eup %1387  ;;  %532 = vst.msk [vmem:[#allocation4] sm:$0xff] %vm394_vm0, %v531_v5  ;;  %v672_v12 = vmul.f32 %v670_v11, %v666_v10  ;;  %v944_v30 = vmul.f32 %v942_v29, %v938_v28 }
 0x53c   : > { %966 = vperm.xlu0 %1365, %v1388_v6  }
 0x53e   : > { %v806_v21 = vpop.permute.xlu1 %805 }
 0x53f   : > { %v808_v22 = vmul.f32 %v806_v21, %v802_v18 }
 0x540   : > { %v981_v7 = vld [vmem:[#allocation3 + $0x18] sm:$0xff] }
 0x541   : > { %1391 = vrcp.f32 %v981_v7 }
 0x542   : > { %v953_v0 = vld [vmem:[#allocation4] sm:$0xff] }
 0x543   : > { %v1390_v8 = vpop.eup %1389 }
 0x544   : > { %976 = vperm.xlu1 %1366, %v1390_v8  }
 0x54b   : > { %v1392_v9 = vpop.eup %1391 }
 0x54c   : > { %986 = vperm.xlu0 %1365, %v1392_v9  }
 0x56b   : > { %v957_v41 = vpop.permute.xlu1 %956 }
 0x56c   : > { %v959_v47 = vmul.f32 %v957_v41, %v953_v0 }
 0x56e   : > { %v960_v49 = vpack.c.bf16 %v959_v47, %v959_v47 }
 0x574   : > { %v659_v13 = vpop.f32.mrb[4].mxu0 }
 0x575   : > { %v673_v14 = vadd.f32 %v672_v12, %v659_v13  ;;  %v1252_v15 = vpop.f32.mrb[5].mxu0 }
 0x576   : > { %v662_v16 = vpop.f32.mrb[6].mxu0 }
 0x577   : > { %674 = vst.msk [vmem:[#allocation4 + $0x8] sm:$0xff] %vm394_vm0, %v673_v14  ;;  %v1253_v40 = vpop.f32.mrb[7].mxu0 }
 0x57c   : > { %v795_v23 = vpop.f32.mrb[8].mxu0 }
 0x57d   : > { %v809_v24 = vadd.f32 %v808_v22, %v795_v23  ;;  %v1264_v25 = vpop.f32.mrb[9].mxu0 }
 0x57e   : > { %v798_v26 = vpop.f32.mrb[10].mxu0  ;;  %v963_v37 = vld [vmem:[#allocation4 + $0x8] sm:$0xff] }
 0x57f   : > { %810 = vst.msk [vmem:[#allocation4 + $0x10] sm:$0xff] %vm394_vm0, %v809_v24  ;;  %v1265_v27 = vpop.f32.mrb[11].mxu0 }
 0x584   : > { %v931_v31 = vpop.f32.mrb[12].mxu0 }
 0x585   : > { %v945_v32 = vadd.f32 %v944_v30, %v931_v31  ;;  %v1276_v33 = vpop.f32.mrb[13].mxu0 }
 0x586   : > { %v934_v34 = vpop.f32.mrb[14].mxu0  ;;  %v973_v43 = vld [vmem:[#allocation4 + $0x10] sm:$0xff] }
 0x587   : > { %946 = vst.msk [vmem:[#allocation4 + $0x18] sm:$0xff] %vm394_vm0, %v945_v32  ;;  %v1277_v35 = vpop.f32.mrb[15].mxu0 }
 0x58e   : > { %v983_v20 = vld [vmem:[#allocation4 + $0x18] sm:$0xff] }
 0x5bb   : > { %v967_v36 = vpop.permute.xlu0 %966 }
 0x5bc   : > { %v969_v38 = vmul.f32 %v967_v36, %v963_v37 }
 0x5be   : > { %v970_v39 = vpack.c.bf16 %v969_v38, %v969_v38 }
 0x5c0   : > { %992 = vrot.lane.b32.xlu1 %v970_v39, %s1616_s26 }
 0x5c3   : > { %v977_v42 = vpop.permute.xlu1 %976 }
 0x5c4   : > { %v979_v44 = vmul.f32 %v977_v42, %v973_v43 }
 0x5c6   : > { %v980_v17 = vpack.c.bf16 %v979_v44, %v979_v44 }
 0x5c8   : > { %995 = vrot.lane.b32.xlu0 %v980_v17, %s1617_s24 }
 0x5cb   : > { %v987_v19 = vpop.permute.xlu0 %986 }
 0x5cc   : > { %v989_v45 = vmul.f32 %v987_v19, %v983_v20 }
 0x5ce   : > { %v990_v46 = vpack.c.bf16 %v989_v45, %v989_v45 }
 0x5d0   : > { %998 = vrot.lane.b32.xlu1 %v990_v46, %s1618_s14 }
 0x632   : > { %v993_v48 = vpop.permute.xlu1 %992 }
 0x633   : > { %v1002_v51 = vsel %vm394_vm0, %v960_v49, %v993_v48 }
 0x63a   : > { %v996_v50 = vpop.permute.xlu0 %995 }
 0x63b   : > { %v1005_v52 = vsel %vm1003_vm6, %v1002_v51, %v996_v50 }
 0x642   : > { %v999_v53 = vpop.permute.xlu1 %998 }
 0x643   : > { %v1008_v54 = vsel %vm1006_vm7, %v1005_v52, %v999_v53 }
 0x644   : > { %1011 = vst.msk [vmem:[%s356_s11] sm:$0xf] %vm1010_vm8, %v1008_v54 }
 0x645   : > { %1526 = shalt.err (!%p1523_p5)
}
 0x646   : > { %s1527_s10 = scalar_lea.hbm %s2033_s22, 64  ;;  %s1531_s29 = scalar_lea.hbm %s2086_s4, 128 }
 0x647   : > { %p1528_p3 = scmp.ne.s32.totalorder %s2033_s22, %s1527_s10  ;;  %p1532_p9 = scmp.lt.u32.totalorder %s2033_s22, %s2086_s4 }
 0x648   : > { %p1533_p12 = scmp.lt.u32.totalorder %s1531_s29, %s1527_s10  ;;  %p1535_p0 = scmp.lt.u32.totalorder %s1527_s10, %s2033_s22 }
 0x649   : > { %p1529_p6 = pnand %p1528_p3, %p2116_p11 }
 0x64a   : > { %p1534_p2 = por %p1533_p12, %p1532_p9 }
 0x64b   : > { %p1530_p4 = pneg %p1529_p6 }
 0x64c   : > { %p1536_p10 = por %p1535_p0, %p1534_p2 }
 0x64e   : > { %p1537_p13 = pnand %p1536_p10, %p1530_p4 }
 0x650   : > { %1540 = shalt.err (!%p1537_p13)
}
 0x651   : > { %1286 = dma.vmem_to_hbm [thread:$0]  (%p2116_p11), %s2035_s13, 64, %s2033_s22, %s1013_s18  }
 0x652 PF: > { %s2117_s27 = sld [smem:[#allocation20_spill]]  ;;  %s1039_s25 = sand.u32 1, %s1583_s15  }
 0x653   : > { %p2118_p7 = scmp.ne.s32.totalorder %s2105_s30, 0  ;;  %s1040_s26 = scalar_lea.sflag [#allocation8], %s1039_s25 }
 0x658   : > { %p2119_p1 = scmp.ge.s32.totalorder %s2117_s27, 2 }
 0x65a   : > { %p1302_p8 = pnand %p2119_p1, %p2118_p7 }
 0x65c   : > { %1578 = dma.done.wait (!%p1302_p8), %s1040_s26, 64  }
 0x65d   : > { %1580 = vsyncadd (!%p1302_p8), %s1040_s26, 4294967232  ;;  %s26_s20 = sadd.s32 1, %s2117_s27   ;;  %s2120_s24 = sld [smem:[#allocation19_spill]] }
 0x65e   : > { %p23_p5 = scmp.ge.s32.totalorder %s26_s20, 4   ;;  %s2121_s17 = sld [smem:[#allocation22_spill]] }
 0x65f   : > { %s2122_s28 = sld [smem:[#allocation21_spill]]  ;;  %s2123_s15 = smov %s1587_s16 }
 0x660   : > { %s2125_s18 = smov %s1599_s19  ;;  %25 = sbr.rel (!%p23_p5) target bundleno = 12 (0xc), region = 141 }
 0x663   : > { %s2124_s16 = smov %s2120_s24 }
 0x665   : > { %s2126_s19 = smov %s2122_s28 }
 0x667   :  { %1045 = vsyncpa [#allocation7], 1 }
 0x668   :  { %1047 = vsyncpa [#allocation7 + $0x1], 1 }
 0x669   :  { %1048 = vsyncpa [#allocation10], 1 }
 0x66a   :  { %1050 = vsyncpa [#allocation10 + $0x1], 1 }
 0x66b   :  { %1051 = vsyncpa [#allocation13], 1 }
 0x66c   :  { %1053 = vsyncpa [#allocation13 + $0x1], 1 }
 0x66d   :  { %1054 = vsyncpa [#allocation8], 1 }
 0x66e   :  { %1056 = vsyncpa [#allocation8 + $0x1], 1 }

</bundles_post_ra>
